<compile_context>
chip_gen: v7x
topology: tpu7x:2x2x1
jax: 0.10.0
libtpu: 0.0.40
codegen_flags: <defaults>
</compile_context>

<pallas_src>
import functools
import math

import jax
import jax.numpy as jnp
from jax.experimental import pallas as pl
from jax.experimental.pallas import tpu as pltpu

_VMEM_LIMIT = 32 * 1024 * 1024  # safe on v5e/v6e (128 MiB phys) and v7x (64 MiB phys)


# ---------------------------------------------------------------------------
# Tile-size helpers
# ---------------------------------------------------------------------------
def _sublane_pack(dtype) -> int:
    # f32 -> 8, bf16 -> 16, int8/fp8 -> 32
    return 8 * max(1, 4 // jnp.dtype(dtype).itemsize)


def _pick_n_tile(d_out: int) -> int:
    if d_out <= 1024:
        return d_out  # full extent (always legal)
    for tn in (1024, 512, 256, 128):
        if d_out % tn == 0:
            return tn
    return d_out


def _pick_row_tile(rows: int, pack: int, per_row_bytes: int,
                   budget: int = 8 * 1024 * 1024) -> int:
    cap = (budget // max(per_row_bytes, 1)) // pack * pack
    cap = int(max(pack, min(cap, 2048)))
    return rows if rows <= cap else cap


def _pick_q_tile(seq: int) -> int:
    if seq <= 512:
        return seq
    for t in (512, 256, 128, 64, 32, 16, 8):
        if seq % t == 0:
            return t
    return seq


# ---------------------------------------------------------------------------
# Kernel 1: fused RMSNorm + projection      out = RMSNorm(x) @ W
# ---------------------------------------------------------------------------
def _rmsnorm_matmul_kernel(x_ref, g_ref, w_ref, o_ref, *, eps: float):
    x = x_ref[...].astype(jnp.float32)                    # (tm, D)
    g = g_ref[...]                                        # (1, D), already f32
    ms = jnp.mean(x * x, axis=-1, keepdims=True)
    xn = (x * g * jax.lax.rsqrt(ms + eps)).astype(x_ref.dtype)
    acc = jnp.dot(xn, w_ref[...], preferred_element_type=jnp.float32)
    o_ref[...] = acc.astype(o_ref.dtype)


def fused_rmsnorm_matmul(x2d, gain, w_t, eps):
    rows, d_in = x2d.shape
    d_out = w_t.shape[1]
    tn = _pick_n_tile(d_out)
    pack = _sublane_pack(x2d.dtype)
    itm = x2d.dtype.itemsize
    per_row = d_in * (2 * itm + 4) + tn * (2 * itm + 4)
    tm = _pick_row_tile(rows, pack, per_row)
    g2d = gain.astype(jnp.float32).reshape(1, d_in)

    return pl.pallas_call(
        functools.partial(_rmsnorm_matmul_kernel, eps=eps),
        out_shape=jax.ShapeDtypeStruct((rows, d_out), x2d.dtype),
        grid_spec=pltpu.PrefetchScalarGridSpec(
            num_scalar_prefetch=0,
            grid=(pl.cdiv(rows, tm), pl.cdiv(d_out, tn)),
            in_specs=[
                pl.BlockSpec((tm, d_in), lambda i, j: (i, 0)),
                pl.BlockSpec((1, d_in), lambda i, j: (0, 0)),
                pl.BlockSpec((d_in, tn), lambda i, j: (0, j)),
            ],
            out_specs=pl.BlockSpec((tm, tn), lambda i, j: (i, j)),
        ),
        compiler_params=pltpu.CompilerParams(
            dimension_semantics=("parallel", "parallel"),
            vmem_limit_bytes=_VMEM_LIMIT),
    )(x2d, g2d, w_t)


# ---------------------------------------------------------------------------
# Kernel 2: projection + residual           out = resid + a @ W
# ---------------------------------------------------------------------------
def _matmul_resid_kernel(a_ref, w_ref, r_ref, o_ref):
    acc = jnp.dot(a_ref[...], w_ref[...], preferred_element_type=jnp.float32)
    o_ref[...] = (acc + r_ref[...].astype(jnp.float32)).astype(o_ref.dtype)


def matmul_residual(a2d, w_t, resid2d):
    rows, d_in = a2d.shape
    d_out = w_t.shape[1]
    tn = _pick_n_tile(d_out)
    pack = _sublane_pack(a2d.dtype)
    itm = a2d.dtype.itemsize
    per_row = d_in * 2 * itm + tn * (4 * itm + 4)
    tm = _pick_row_tile(rows, pack, per_row)

    return pl.pallas_call(
        _matmul_resid_kernel,
        out_shape=jax.ShapeDtypeStruct((rows, d_out), resid2d.dtype),
        grid_spec=pltpu.PrefetchScalarGridSpec(
            num_scalar_prefetch=0,
            grid=(pl.cdiv(rows, tm), pl.cdiv(d_out, tn)),
            in_specs=[
                pl.BlockSpec((tm, d_in), lambda i, j: (i, 0)),
                pl.BlockSpec((d_in, tn), lambda i, j: (0, j)),
                pl.BlockSpec((tm, tn), lambda i, j: (i, j)),
            ],
            out_specs=pl.BlockSpec((tm, tn), lambda i, j: (i, j)),
        ),
        compiler_params=pltpu.CompilerParams(
            dimension_semantics=("parallel", "parallel"),
            vmem_limit_bytes=_VMEM_LIMIT),
    )(a2d, w_t, resid2d)


# ---------------------------------------------------------------------------
# Kernel 3: SwiGLU gate + down projection + residual
#           out = resid + (silu(h1) * h3) @ W2      with h = [h1 | h3]
# ---------------------------------------------------------------------------
def _swiglu_matmul_resid_kernel(h_ref, w2_ref, r_ref, o_ref):
    h = h_ref[...].astype(jnp.float32)                    # (tm, 2*d_ff)
    d_ff = h.shape[-1] // 2
    h1 = h[:, :d_ff]
    h3 = h[:, d_ff:]
    gate = ((h1 * jax.nn.sigmoid(h1)) * h3).astype(h_ref.dtype)
    acc = jnp.dot(gate, w2_ref[...], preferred_element_type=jnp.float32)
    o_ref[...] = (acc + r_ref[...].astype(jnp.float32)).astype(o_ref.dtype)


def swiglu_matmul_residual(h2d, w2_t, resid2d):
    rows, two_dff = h2d.shape
    d_ff = two_dff // 2
    d_out = w2_t.shape[1]
    tn = _pick_n_tile(d_out)
    pack = _sublane_pack(h2d.dtype)
    itm = h2d.dtype.itemsize
    per_row = two_dff * (2 * itm + 4) + tn * (4 * itm + 4)
    tm = _pick_row_tile(rows, pack, per_row)

    return pl.pallas_call(
        _swiglu_matmul_resid_kernel,
        out_shape=jax.ShapeDtypeStruct((rows, d_out), resid2d.dtype),
        grid_spec=pltpu.PrefetchScalarGridSpec(
            num_scalar_prefetch=0,
            grid=(pl.cdiv(rows, tm), pl.cdiv(d_out, tn)),
            in_specs=[
                pl.BlockSpec((tm, two_dff), lambda i, j: (i, 0)),
                pl.BlockSpec((d_ff, tn), lambda i, j: (0, j)),
                pl.BlockSpec((tm, tn), lambda i, j: (i, j)),
            ],
            out_specs=pl.BlockSpec((tm, tn), lambda i, j: (i, j)),
        ),
        compiler_params=pltpu.CompilerParams(
            dimension_semantics=("parallel", "parallel"),
            vmem_limit_bytes=_VMEM_LIMIT),
    )(h2d, w2_t, resid2d)


# ---------------------------------------------------------------------------
# Kernel 4: fused RoPE + causal attention (per batch*head, query-tiled)
# q/k arrive with the head dim de-interleaved ([even idx | odd idx]), which
# preserves q.k dot products; RoPE is then the standard rotate-half form.
# ---------------------------------------------------------------------------
def _rope_attn_kernel(q_ref, k_ref, v_ref, cos_ref, sin_ref, o_ref, *, scale):
    qi = pl.program_id(1)
    tq = q_ref.shape[1]
    seq = k_ref.shape[1]
    d_k = q_ref.shape[2]
    d2 = d_k // 2

    q = q_ref[0].astype(jnp.float32)                      # (tq, d_k)
    k = k_ref[0].astype(jnp.float32)                      # (S, d_k)
    v = v_ref[0]                                          # (S, d_k)

    cos_k = cos_ref[...]                                  # (S, d2), f32
    sin_k = sin_ref[...]
    q0 = pl.multiple_of(qi * tq, tq)
    cos_q = cos_ref[pl.ds(q0, tq), :]                     # (tq, d2)
    sin_q = sin_ref[pl.ds(q0, tq), :]

    q1, q2 = q[:, :d2], q[:, d2:]
    k1, k2 = k[:, :d2], k[:, d2:]
    qa = q1 * cos_q - q2 * sin_q
    qb = q1 * sin_q + q2 * cos_q
    ka = k1 * cos_k - k2 * sin_k
    kb = k1 * sin_k + k2 * cos_k

    dn = (((1,), (1,)), ((), ()))                         # contract last dims (q @ k^T)
    s = (jax.lax.dot_general(qa, ka, dn, preferred_element_type=jnp.float32) +
         jax.lax.dot_general(qb, kb, dn, preferred_element_type=jnp.float32)) * scale

    q_pos = q0 + jax.lax.broadcasted_iota(jnp.int32, (tq, seq), 0)
    k_pos = jax.lax.broadcasted_iota(jnp.int32, (tq, seq), 1)
    s = jnp.where(q_pos >= k_pos, s, -jnp.inf)

    m = jnp.max(s, axis=-1, keepdims=True)
    p = jnp.exp(s - m)
    l = jnp.sum(p, axis=-1, keepdims=True)
    out = jnp.dot(p.astype(v.dtype), v, preferred_element_type=jnp.float32) / l
    o_ref[0] = out.astype(o_ref.dtype)


def rope_causal_attention(q, k, v, cos, sin, scale):
    # TODO(synk): for long sequences, tile K/V with an online-softmax (flash)
    # accumulator instead of holding full K/V per head in VMEM.
    bh, seq, d_k = q.shape
    d2 = d_k // 2
    tq = _pick_q_tile(seq)

    return pl.pallas_call(
        functools.partial(_rope_attn_kernel, scale=scale),
        out_shape=jax.ShapeDtypeStruct((bh, seq, d_k), q.dtype),
        grid_spec=pltpu.PrefetchScalarGridSpec(
            num_scalar_prefetch=0,
            grid=(bh, seq // tq),
            in_specs=[
                pl.BlockSpec((1, tq, d_k), lambda b, qi: (b, qi, 0)),
                pl.BlockSpec((1, seq, d_k), lambda b, qi: (b, 0, 0)),
                pl.BlockSpec((1, seq, d_k), lambda b, qi: (b, 0, 0)),
                pl.BlockSpec((seq, d2), lambda b, qi: (0, 0)),
                pl.BlockSpec((seq, d2), lambda b, qi: (0, 0)),
            ],
            out_specs=pl.BlockSpec((1, tq, d_k), lambda b, qi: (b, qi, 0)),
        ),
        compiler_params=pltpu.CompilerParams(
            dimension_semantics=("parallel", "arbitrary"),
            vmem_limit_bytes=_VMEM_LIMIT),
    )(q, k, v, cos, sin)


# ---------------------------------------------------------------------------
# Full TransformerBlock forward (Pallas kernels + thin XLA glue for reshapes)
# ---------------------------------------------------------------------------
def transformer_block_forward(x, params, *, num_heads, theta, eps=1e-5,
                              token_positions=None):
    B, S, D = x.shape
    H = num_heads
    d_k = D // H
    rows = B * S
    x2d = x.reshape(rows, D)

    # Pre-transposed weights -> kernels compute x @ W with lane-dense outputs.
    wqkv_t = params["wqkv"].T                                        # (D, 3D)
    wo_t = params["wo"].T                                            # (D, D)
    w13_t = jnp.concatenate([params["w1"].T, params["w3"].T], axis=1)  # (D, 2*d_ff)
    w2_t = params["w2"].T                                            # (d_ff, D)

    if token_positions is None:
        token_positions = jnp.arange(S)
    kd = jnp.arange(0, d_k, 2, dtype=jnp.float32) / d_k
    angles = token_positions.astype(jnp.float32)[:, None] / (theta ** kd)[None, :]
    cos = jnp.cos(angles)                                            # (S, d_k//2)
    sin = jnp.sin(angles)

    # --- attention sub-block -------------------------------------------------
    qkv = fused_rmsnorm_matmul(x2d, params["g_attn"], wqkv_t, eps)   # (rows, 3D)
    qkv = qkv.reshape(B, S, 3, H, d_k)

    def to_bh(t):      # (B, S, H, d_k) -> (B*H, S, d_k)
        return t.transpose(0, 2, 1, 3).reshape(B * H, S, d_k)

    def deinterleave(t):   # pair-interleaved -> [evens | odds] (dot-product safe)
        return jnp.concatenate([t[..., 0::2], t[..., 1::2]], axis=-1)

    q = to_bh(deinterleave(qkv[:, :, 0]))
    k = to_bh(deinterleave(qkv[:, :, 1]))
    v = to_bh(qkv[:, :, 2])

    attn = rope_causal_attention(q, k, v, cos, sin, scale=1.0 / math.sqrt(d_k))
    attn2d = attn.reshape(B, H, S, d_k).transpose(0, 2, 1, 3).reshape(rows, D)

    x1 = matmul_residual(attn2d, wo_t, x2d)                          # x + o_proj(attn)

    # --- FFN sub-block -------------------------------------------------------
    h = fused_rmsnorm_matmul(x1, params["g_ffn"], w13_t, eps)        # (rows, 2*d_ff)
    x2 = swiglu_matmul_residual(h, w2_t, x1)                         # x1 + w2(silu*gate)

    return x2.reshape(B, S, D)


# ---------------------------------------------------------------------------
# Pure-JAX reference (mirrors the PyTorch module exactly)
# ---------------------------------------------------------------------------
def transformer_block_ref(x, p, *, num_heads, theta, eps=1e-5, token_positions=None):
    B, S, D = x.shape
    H = num_heads
    d_k = D // H
    dt = x.dtype

    def rmsnorm(z, w):
        zf = z.astype(jnp.float32)
        rms = jnp.sqrt(jnp.mean(zf * zf, axis=-1, keepdims=True) + eps)
        return (zf * w.astype(jnp.float32) / rms).astype(dt)

    if token_positions is None:
        token_positions = jnp.arange(S)
    kd = jnp.arange(0, d_k, 2, dtype=jnp.float32) / d_k
    angles = token_positions.astype(jnp.float32)[:, None] / (theta ** kd)[None, :]
    cos, sin = jnp.cos(angles), jnp.sin(angles)

    def rope(t):   # (B, H, S, d_k), interleaved pairs
        te, to = t[..., 0::2], t[..., 1::2]
        re = te * cos - to * sin
        ro = te * sin + to * cos
        return jnp.stack([re, ro], axis=-1).reshape(t.shape)

    xn = rmsnorm(x, p["g_attn"])
    qkv = jnp.einsum("bsd,ed->bse", xn, p["wqkv"])
    q, k, v = jnp.split(qkv, 3, axis=-1)

    def heads(t):
        return t.reshape(B, S, H, d_k).transpose(0, 2, 1, 3)

    q, k, v = rope(heads(q)), rope(heads(k)), heads(v)
    scores = jnp.einsum("bhqd,bhkd->bhqk", q.astype(jnp.float32),
                        k.astype(jnp.float32)) / math.sqrt(d_k)
    mask = jnp.tril(jnp.ones((S, S), dtype=bool))
    scores = jnp.where(mask, scores, -jnp.inf)
    m = scores.max(axis=-1, keepdims=True)
    e = jnp.exp(scores - m)
    attnw = e / e.sum(axis=-1, keepdims=True)
    attn = jnp.einsum("bhqk,bhkd->bhqd", attnw, v.astype(jnp.float32)).astype(dt)
    attn = attn.transpose(0, 2, 1, 3).reshape(B, S, D)
    x = x + jnp.einsum("bsd,ed->bse", attn, p["wo"])

    xn = rmsnorm(x, p["g_ffn"])
    h1 = jnp.einsum("bsd,fd->bsf", xn, p["w1"])
    h3 = jnp.einsum("bsd,fd->bsf", xn, p["w3"])
    g = h1 * jax.nn.sigmoid(h1) * h3
    x = x + jnp.einsum("bsf,df->bsd", g, p["w2"])
    return x


if __name__ == "__main__":
    batch, seq = 2, 16
    d_model, num_heads, d_ff = 64, 4, 128        # d_ff % 64 == 0
    theta, eps = 10000.0, 1e-5
    dt = jnp.float32

    key = jax.random.PRNGKey(0)
    ks = jax.random.split(key, 8)

    def init(k, shape, fan_in, fan_out):
        std = math.sqrt(2.0 / (fan_in + fan_out))
        return (std * jax.random.truncated_normal(k, -3.0, 3.0, shape)).astype(dt)

    params = {
        "g_attn": jnp.ones((d_model,), dt) + 0.02 * jax.random.normal(ks[0], (d_model,), dt),
        "g_ffn":  jnp.ones((d_model,), dt) + 0.02 * jax.random.normal(ks[1], (d_model,), dt),
        "wqkv":   init(ks[2], (3 * d_model, d_model), d_model, 3 * d_model),
        "wo":     init(ks[3], (d_model, d_model), d_model, d_model),
        "w1":     init(ks[4], (d_ff, d_model), d_model, d_ff),
        "w2":     init(ks[5], (d_model, d_ff), d_ff, d_model),
        "w3":     init(ks[6], (d_ff, d_model), d_model, d_ff),
    }
    x = jax.random.normal(ks[7], (batch, seq, d_model), dtype=dt)

    fwd = jax.jit(functools.partial(transformer_block_forward,
                                    num_heads=num_heads, theta=theta, eps=eps))
    y = fwd(x, params)
    jax.block_until_ready(y)

    y_ref = transformer_block_ref(x, params, num_heads=num_heads, theta=theta, eps=eps)
    assert y.shape == x.shape and y.dtype == x.dtype
    max_err = float(jnp.max(jnp.abs(y - y_ref)))
    assert jnp.allclose(y, y_ref, atol=2e-2, rtol=2e-2), f"max abs err {max_err}"

    print("KERNEL_OK")
</pallas_src>

<mosaic_0001>
module attributes {stable_mosaic.version = 11 : i64} {
  func.func @_rmsnorm_matmul_kernel(%arg0: i32, %arg1: i32, %arg2: memref<32x64xf32, #tpu.memory_space<vmem>>, %arg3: memref<1x64xf32, #tpu.memory_space<vmem>>, %arg4: memref<64x192xf32, #tpu.memory_space<vmem>>, %arg5: memref<32x192xf32, #tpu.memory_space<vmem>>) attributes {dimension_semantics = [#tpu.dimension_semantics<parallel>, #tpu.dimension_semantics<parallel>], iteration_bounds = array<i64: 1, 1>, scalar_prefetch = 0 : i64, scratch_operands = 0 : i64, tpu.core_type = #tpu.core_type<tc>, window_params = [{transform_indices = @transform_0, window_bounds = array<i64: 32, 64>}, {pipeline_mode = #tpu.pipeline_mode<synchronous>, transform_indices = @transform_1, window_bounds = array<i64: 1, 64>}, {transform_indices = @transform_2, window_bounds = array<i64: 64, 192>}, {transform_indices = @transform_3, window_bounds = array<i64: 32, 192>}]} {
    %c0 = arith.constant 0 : index
    %c0_0 = arith.constant 0 : index
    %0 = vector.load %arg2[%c0, %c0_0] : memref<32x64xf32, #tpu.memory_space<vmem>>, vector<32x64xf32>
    %c0_1 = arith.constant 0 : index
    %c0_2 = arith.constant 0 : index
    %1 = vector.load %arg3[%c0_1, %c0_2] : memref<1x64xf32, #tpu.memory_space<vmem>>, vector<1x64xf32>
    %2 = arith.mulf %0, %0 : vector<32x64xf32>
    %cst = arith.constant dense<0.000000e+00> : vector<32xf32>
    %3 = vector.multi_reduction <add>, %2, %cst [1] : vector<32x64xf32> to vector<32xf32>
    %4 = vector.shape_cast %3 : vector<32xf32> to vector<32x1xf32>
    %cst_3 = arith.constant 6.400000e+01 : f32
    %5 = vector.broadcast %cst_3 : f32 to vector<32x1xf32>
    %6 = arith.divf %4, %5 : vector<32x1xf32>
    %7 = vector.broadcast %1 : vector<1x64xf32> to vector<32x64xf32>
    %8 = arith.mulf %0, %7 : vector<32x64xf32>
    %cst_4 = arith.constant 9.99999974E-6 : f32
    %9 = vector.broadcast %cst_4 : f32 to vector<32x1xf32>
    %10 = arith.addf %6, %9 : vector<32x1xf32>
    %11 = math.rsqrt %10 : vector<32x1xf32>
    %12 = vector.broadcast %11 : vector<32x1xf32> to vector<32x64xf32>
    %13 = arith.mulf %8, %12 : vector<32x64xf32>
    %c0_5 = arith.constant 0 : index
    %c0_6 = arith.constant 0 : index
    %14 = vector.load %arg4[%c0_5, %c0_6] : memref<64x192xf32, #tpu.memory_space<vmem>>, vector<64x192xf32>
    %cst_7 = arith.constant dense<0.000000e+00> : vector<32x192xf32>
    %15 = tpu.matmul %13, %14, %cst_7 {dimension_numbers = #tpu.dot_dimension_numbers<[1], [0], [0], [1], [0, 0, 1, 1], [], []>} : vector<32x64xf32>, vector<64x192xf32>, vector<32x192xf32> -> vector<32x192xf32>
    %c0_8 = arith.constant 0 : index
    %c0_9 = arith.constant 0 : index
    %16 = vector.load %arg5[%c0_8, %c0_9] : memref<32x192xf32, #tpu.memory_space<vmem>>, vector<32x192xf32>
    tpu.vector_store %arg5[%c0_8, %c0_9], %15 {strides = array<i32>} : memref<32x192xf32, #tpu.memory_space<vmem>>, vector<32x192xf32>,
    return
  }
  func.func @transform_0(%arg0: i32, %arg1: i32) -> (i32, i32) {
    %c0_i32 = arith.constant 0 : i32
    %c0_i32_0 = arith.constant 0 : i32
    return %arg0, %c0_i32 : i32, i32
  }
  func.func @transform_1(%arg0: i32, %arg1: i32) -> (i32, i32) {
    %c0_i32 = arith.constant 0 : i32
    %c0_i32_0 = arith.constant 0 : i32
    %c0_i32_1 = arith.constant 0 : i32
    return %c0_i32, %c0_i32_0 : i32, i32
  }
  func.func @transform_2(%arg0: i32, %arg1: i32) -> (i32, i32) {
    %c0_i32 = arith.constant 0 : i32
    %c0_i32_0 = arith.constant 0 : i32
    return %c0_i32, %arg1 : i32, i32
  }
  func.func @transform_3(%arg0: i32, %arg1: i32) -> (i32, i32) {
    %c0_i32 = arith.constant 0 : i32
    return %arg0, %arg1 : i32, i32
  }
}

module attributes {stable_mosaic.version = 11 : i64} {
  func.func @_rope_attn_kernel(%arg0: i32, %arg1: i32, %arg2: memref<1x16x16xf32, #tpu.memory_space<vmem>>, %arg3: memref<1x16x16xf32, #tpu.memory_space<vmem>>, %arg4: memref<1x16x16xf32, #tpu.memory_space<vmem>>, %arg5: memref<16x8xf32, #tpu.memory_space<vmem>>, %arg6: memref<16x8xf32, #tpu.memory_space<vmem>>, %arg7: memref<1x16x16xf32, #tpu.memory_space<vmem>>) attributes {dimension_semantics = [#tpu.dimension_semantics<parallel>, #tpu.dimension_semantics<arbitrary>], iteration_bounds = array<i64: 8, 1>, scalar_prefetch = 0 : i64, scratch_operands = 0 : i64, tpu.core_type = #tpu.core_type<tc>, window_params = [{transform_indices = @transform_0, window_bounds = array<i64: 1, 16, 16>}, {transform_indices = @transform_1, window_bounds = array<i64: 1, 16, 16>}, {transform_indices = @transform_2, window_bounds = array<i64: 1, 16, 16>}, {pipeline_mode = #tpu.pipeline_mode<synchronous>, transform_indices = @transform_3, window_bounds = array<i64: 16, 8>}, {pipeline_mode = #tpu.pipeline_mode<synchronous>, transform_indices = @transform_4, window_bounds = array<i64: 16, 8>}, {transform_indices = @transform_5, window_bounds = array<i64: 1, 16, 16>}]} {
    %c0 = arith.constant 0 : index
    %c0_0 = arith.constant 0 : index
    %c0_1 = arith.constant 0 : index
    %0 = vector.load %arg2[%c0, %c0_0, %c0_1] : memref<1x16x16xf32, #tpu.memory_space<vmem>>, vector<1x16x16xf32>
    %1 = vector.shape_cast %0 : vector<1x16x16xf32> to vector<16x16xf32>
    %c0_2 = arith.constant 0 : index
    %c0_3 = arith.constant 0 : index
    %c0_4 = arith.constant 0 : index
    %2 = vector.load %arg3[%c0_2, %c0_3, %c0_4] : memref<1x16x16xf32, #tpu.memory_space<vmem>>, vector<1x16x16xf32>
    %3 = vector.shape_cast %2 : vector<1x16x16xf32> to vector<16x16xf32>
    %c0_5 = arith.constant 0 : index
    %c0_6 = arith.constant 0 : index
    %c0_7 = arith.constant 0 : index
    %4 = vector.load %arg4[%c0_5, %c0_6, %c0_7] : memref<1x16x16xf32, #tpu.memory_space<vmem>>, vector<1x16x16xf32>
    %5 = vector.shape_cast %4 : vector<1x16x16xf32> to vector<16x16xf32>
    %c0_8 = arith.constant 0 : index
    %c0_9 = arith.constant 0 : index
    %6 = vector.load %arg5[%c0_8, %c0_9] : memref<16x8xf32, #tpu.memory_space<vmem>>, vector<16x8xf32>
    %c0_10 = arith.constant 0 : index
    %c0_11 = arith.constant 0 : index
    %7 = vector.load %arg6[%c0_10, %c0_11] : memref<16x8xf32, #tpu.memory_space<vmem>>, vector<16x8xf32>
    %c16_i32 = arith.constant 16 : i32
    %8 = arith.muli %arg1, %c16_i32 : i32
    %9 = tpu.assume_multiple %8, 16 : i32
    %10 = arith.index_cast %9 : i32 to index
    %c0_12 = arith.constant 0 : index
    %11 = vector.load %arg5[%10, %c0_12] : memref<16x8xf32, #tpu.memory_space<vmem>>, vector<16x8xf32>
    %12 = arith.index_cast %9 : i32 to index
    %c0_13 = arith.constant 0 : index
    %13 = vector.load %arg6[%12, %c0_13] : memref<16x8xf32, #tpu.memory_space<vmem>>, vector<16x8xf32>
    %14 = vector.extract_strided_slice %1 {offsets = [0, 0], sizes = [16, 8], strides = [1, 1]} : vector<16x16xf32> to vector<16x8xf32>
    %15 = vector.extract_strided_slice %1 {offsets = [0, 8], sizes = [16, 8], strides = [1, 1]} : vector<16x16xf32> to vector<16x8xf32>
    %16 = vector.extract_strided_slice %3 {offsets = [0, 0], sizes = [16, 8], strides = [1, 1]} : vector<16x16xf32> to vector<16x8xf32>
    %17 = vector.extract_strided_slice %3 {offsets = [0, 8], sizes = [16, 8], strides = [1, 1]} : vector<16x16xf32> to vector<16x8xf32>
    %18 = arith.mulf %14, %11 : vector<16x8xf32>
    %19 = arith.mulf %15, %13 : vector<16x8xf32>
    %20 = arith.subf %18, %19 : vector<16x8xf32>
    %21 = arith.mulf %14, %13 : vector<16x8xf32>
    %22 = arith.mulf %15, %11 : vector<16x8xf32>
    %23 = arith.addf %21, %22 : vector<16x8xf32>
    %24 = arith.mulf %16, %6 : vector<16x8xf32>
    %25 = arith.mulf %17, %7 : vector<16x8xf32>
    %26 = arith.subf %24, %25 : vector<16x8xf32>
    %27 = arith.mulf %16, %7 : vector<16x8xf32>
    %28 = arith.mulf %17, %6 : vector<16x8xf32>
    %29 = arith.addf %27, %28 : vector<16x8xf32>
    %cst = arith.constant dense<0.000000e+00> : vector<16x16xf32>
    %30 = tpu.matmul %20, %26, %cst {dimension_numbers = #tpu.dot_dimension_numbers<[1], [1], [0], [0], [0, 0, 1, 0], [], []>} : vector<16x8xf32>, vector<16x8xf32>, vector<16x16xf32> -> vector<16x16xf32>
    %cst_14 = arith.constant dense<0.000000e+00> : vector<16x16xf32>
    %31 = tpu.matmul %23, %29, %cst_14 {dimension_numbers = #tpu.dot_dimension_numbers<[1], [1], [0], [0], [0, 0, 1, 0], [], []>} : vector<16x8xf32>, vector<16x8xf32>, vector<16x16xf32> -> vector<16x16xf32>
    %32 = arith.addf %30, %31 : vector<16x16xf32>
    %cst_15 = arith.constant 2.500000e-01 : f32
    %33 = vector.broadcast %cst_15 : f32 to vector<16x16xf32>
    %34 = arith.mulf %32, %33 : vector<16x16xf32>
    %35 = tpu.iota {dimensions = array<i32: 0>} : vector<16x16xi32>
    %36 = vector.broadcast %9 : i32 to vector<16x16xi32>
    %37 = arith.addi %36, %35 : vector<16x16xi32>
    %38 = tpu.iota {dimensions = array<i32: 1>} : vector<16x16xi32>
    %39 = arith.cmpi sge, %37, %38 : vector<16x16xi32>
    %cst_16 = arith.constant 0xFF800000 : f32
    %40 = vector.broadcast %cst_16 : f32 to vector<16x16xf32>
    %41 = arith.select %39, %34, %40 : vector<16x16xi1>, vector<16x16xf32>
    %cst_17 = arith.constant dense<0xFF800000> : vector<16xf32>
    %42 = vector.multi_reduction <maximumf>, %41, %cst_17 [1] : vector<16x16xf32> to vector<16xf32>
    %43 = vector.shape_cast %42 : vector<16xf32> to vector<16x1xf32>
    %44 = vector.broadcast %43 : vector<16x1xf32> to vector<16x16xf32>
    %45 = arith.subf %41, %44 : vector<16x16xf32>
    %46 = math.exp %45 : vector<16x16xf32>
    %cst_18 = arith.constant dense<0.000000e+00> : vector<16xf32>
    %47 = vector.multi_reduction <add>, %46, %cst_18 [1] : vector<16x16xf32> to vector<16xf32>
    %48 = vector.shape_cast %47 : vector<16xf32> to vector<16x1xf32>
    %cst_19 = arith.constant dense<0.000000e+00> : vector<16x16xf32>
    %49 = tpu.matmul %46, %5, %cst_19 {dimension_numbers = #tpu.dot_dimension_numbers<[1], [0], [0], [1], [0, 0, 1, 1], [], []>} : vector<16x16xf32>, vector<16x16xf32>, vector<16x16xf32> -> vector<16x16xf32>
    %50 = vector.broadcast %48 : vector<16x1xf32> to vector<16x16xf32>
    %51 = arith.divf %49, %50 : vector<16x16xf32>
    %c0_20 = arith.constant 0 : index
    %c0_21 = arith.constant 0 : index
    %c0_22 = arith.constant 0 : index
    %52 = vector.load %arg7[%c0_20, %c0_21, %c0_22] : memref<1x16x16xf32, #tpu.memory_space<vmem>>, vector<1x16x16xf32>
    %53 = vector.shape_cast %52 : vector<1x16x16xf32> to vector<16x16xf32>
    %54 = vector.shape_cast %51 : vector<16x16xf32> to vector<1x16x16xf32>
    tpu.vector_store %arg7[%c0_20, %c0_21, %c0_22], %54 {strides = array<i32>} : memref<1x16x16xf32, #tpu.memory_space<vmem>>, vector<1x16x16xf32>,
    return
  }
  func.func @transform_0(%arg0: i32, %arg1: i32) -> (i32, i32, i32) {
    %c0_i32 = arith.constant 0 : i32
    %c0_i32_0 = arith.constant 0 : i32
    return %arg0, %arg1, %c0_i32 : i32, i32, i32
  }
  func.func @transform_1(%arg0: i32, %arg1: i32) -> (i32, i32, i32) {
    %c0_i32 = arith.constant 0 : i32
    %c0_i32_0 = arith.constant 0 : i32
    %c0_i32_1 = arith.constant 0 : i32
    return %arg0, %c0_i32, %c0_i32_0 : i32, i32, i32
  }
  func.func @transform_2(%arg0: i32, %arg1: i32) -> (i32, i32, i32) {
    %c0_i32 = arith.constant 0 : i32
    %c0_i32_0 = arith.constant 0 : i32
    %c0_i32_1 = arith.constant 0 : i32
    return %arg0, %c0_i32, %c0_i32_0 : i32, i32, i32
  }
  func.func @transform_3(%arg0: i32, %arg1: i32) -> (i32, i32) {
    %c0_i32 = arith.constant 0 : i32
    %c0_i32_0 = arith.constant 0 : i32
    %c0_i32_1 = arith.constant 0 : i32
    return %c0_i32, %c0_i32_0 : i32, i32
  }
  func.func @transform_4(%arg0: i32, %arg1: i32) -> (i32, i32) {
    %c0_i32 = arith.constant 0 : i32
    %c0_i32_0 = arith.constant 0 : i32
    %c0_i32_1 = arith.constant 0 : i32
    return %c0_i32, %c0_i32_0 : i32, i32
  }
  func.func @transform_5(%arg0: i32, %arg1: i32) -> (i32, i32, i32) {
    %c0_i32 = arith.constant 0 : i32
    %c0_i32_0 = arith.constant 0 : i32
    return %arg0, %arg1, %c0_i32 : i32, i32, i32
  }
}

module attributes {stable_mosaic.version = 11 : i64} {
  func.func @_matmul_resid_kernel(%arg0: i32, %arg1: i32, %arg2: memref<32x64xf32, #tpu.memory_space<vmem>>, %arg3: memref<64x64xf32, #tpu.memory_space<vmem>>, %arg4: memref<32x64xf32, #tpu.memory_space<vmem>>, %arg5: memref<32x64xf32, #tpu.memory_space<vmem>>) attributes {dimension_semantics = [#tpu.dimension_semantics<parallel>, #tpu.dimension_semantics<parallel>], iteration_bounds = array<i64: 1, 1>, scalar_prefetch = 0 : i64, scratch_operands = 0 : i64, tpu.core_type = #tpu.core_type<tc>, window_params = [{transform_indices = @transform_0, window_bounds = array<i64: 32, 64>}, {transform_indices = @transform_1, window_bounds = array<i64: 64, 64>}, {transform_indices = @transform_2, window_bounds = array<i64: 32, 64>}, {transform_indices = @transform_3, window_bounds = array<i64: 32, 64>}]} {
    %c0 = arith.constant 0 : index
    %c0_0 = arith.constant 0 : index
    %0 = vector.load %arg2[%c0, %c0_0] : memref<32x64xf32, #tpu.memory_space<vmem>>, vector<32x64xf32>
    %c0_1 = arith.constant 0 : index
    %c0_2 = arith.constant 0 : index
    %1 = vector.load %arg3[%c0_1, %c0_2] : memref<64x64xf32, #tpu.memory_space<vmem>>, vector<64x64xf32>
    %cst = arith.constant dense<0.000000e+00> : vector<32x64xf32>
    %2 = tpu.matmul %0, %1, %cst {dimension_numbers = #tpu.dot_dimension_numbers<[1], [0], [0], [1], [0, 0, 1, 1], [], []>} : vector<32x64xf32>, vector<64x64xf32>, vector<32x64xf32> -> vector<32x64xf32>
    %c0_3 = arith.constant 0 : index
    %c0_4 = arith.constant 0 : index
    %3 = vector.load %arg4[%c0_3, %c0_4] : memref<32x64xf32, #tpu.memory_space<vmem>>, vector<32x64xf32>
    %4 = arith.addf %2, %3 : vector<32x64xf32>
    %c0_5 = arith.constant 0 : index
    %c0_6 = arith.constant 0 : index
    %5 = vector.load %arg5[%c0_5, %c0_6] : memref<32x64xf32, #tpu.memory_space<vmem>>, vector<32x64xf32>
    tpu.vector_store %arg5[%c0_5, %c0_6], %4 {strides = array<i32>} : memref<32x64xf32, #tpu.memory_space<vmem>>, vector<32x64xf32>,
    return
  }
  func.func @transform_0(%arg0: i32, %arg1: i32) -> (i32, i32) {
    %c0_i32 = arith.constant 0 : i32
    %c0_i32_0 = arith.constant 0 : i32
    return %arg0, %c0_i32 : i32, i32
  }
  func.func @transform_1(%arg0: i32, %arg1: i32) -> (i32, i32) {
    %c0_i32 = arith.constant 0 : i32
    %c0_i32_0 = arith.constant 0 : i32
    return %c0_i32, %arg1 : i32, i32
  }
  func.func @transform_2(%arg0: i32, %arg1: i32) -> (i32, i32) {
    %c0_i32 = arith.constant 0 : i32
    return %arg0, %arg1 : i32, i32
  }
  func.func @transform_3(%arg0: i32, %arg1: i32) -> (i32, i32) {
    %c0_i32 = arith.constant 0 : i32
    return %arg0, %arg1 : i32, i32
  }
}

module attributes {stable_mosaic.version = 11 : i64} {
  func.func @_rmsnorm_matmul_kernel(%arg0: i32, %arg1: i32, %arg2: memref<32x64xf32, #tpu.memory_space<vmem>>, %arg3: memref<1x64xf32, #tpu.memory_space<vmem>>, %arg4: memref<64x256xf32, #tpu.memory_space<vmem>>, %arg5: memref<32x256xf32, #tpu.memory_space<vmem>>) attributes {dimension_semantics = [#tpu.dimension_semantics<parallel>, #tpu.dimension_semantics<parallel>], iteration_bounds = array<i64: 1, 1>, scalar_prefetch = 0 : i64, scratch_operands = 0 : i64, tpu.core_type = #tpu.core_type<tc>, window_params = [{transform_indices = @transform_0, window_bounds = array<i64: 32, 64>}, {pipeline_mode = #tpu.pipeline_mode<synchronous>, transform_indices = @transform_1, window_bounds = array<i64: 1, 64>}, {transform_indices = @transform_2, window_bounds = array<i64: 64, 256>}, {transform_indices = @transform_3, window_bounds = array<i64: 32, 256>}]} {
    %c0 = arith.constant 0 : index
    %c0_0 = arith.constant 0 : index
    %0 = vector.load %arg2[%c0, %c0_0] : memref<32x64xf32, #tpu.memory_space<vmem>>, vector<32x64xf32>
    %c0_1 = arith.constant 0 : index
    %c0_2 = arith.constant 0 : index
    %1 = vector.load %arg3[%c0_1, %c0_2] : memref<1x64xf32, #tpu.memory_space<vmem>>, vector<1x64xf32>
    %2 = arith.mulf %0, %0 : vector<32x64xf32>
    %cst = arith.constant dense<0.000000e+00> : vector<32xf32>
    %3 = vector.multi_reduction <add>, %2, %cst [1] : vector<32x64xf32> to vector<32xf32>
    %4 = vector.shape_cast %3 : vector<32xf32> to vector<32x1xf32>
    %cst_3 = arith.constant 6.400000e+01 : f32
    %5 = vector.broadcast %cst_3 : f32 to vector<32x1xf32>
    %6 = arith.divf %4, %5 : vector<32x1xf32>
    %7 = vector.broadcast %1 : vector<1x64xf32> to vector<32x64xf32>
    %8 = arith.mulf %0, %7 : vector<32x64xf32>
    %cst_4 = arith.constant 9.99999974E-6 : f32
    %9 = vector.broadcast %cst_4 : f32 to vector<32x1xf32>
    %10 = arith.addf %6, %9 : vector<32x1xf32>
    %11 = math.rsqrt %10 : vector<32x1xf32>
    %12 = vector.broadcast %11 : vector<32x1xf32> to vector<32x64xf32>
    %13 = arith.mulf %8, %12 : vector<32x64xf32>
    %c0_5 = arith.constant 0 : index
    %c0_6 = arith.constant 0 : index
    %14 = vector.load %arg4[%c0_5, %c0_6] : memref<64x256xf32, #tpu.memory_space<vmem>>, vector<64x256xf32>
    %cst_7 = arith.constant dense<0.000000e+00> : vector<32x256xf32>
    %15 = tpu.matmul %13, %14, %cst_7 {dimension_numbers = #tpu.dot_dimension_numbers<[1], [0], [0], [1], [0, 0, 1, 1], [], []>} : vector<32x64xf32>, vector<64x256xf32>, vector<32x256xf32> -> vector<32x256xf32>
    %c0_8 = arith.constant 0 : index
    %c0_9 = arith.constant 0 : index
    %16 = vector.load %arg5[%c0_8, %c0_9] : memref<32x256xf32, #tpu.memory_space<vmem>>, vector<32x256xf32>
    tpu.vector_store %arg5[%c0_8, %c0_9], %15 {strides = array<i32>} : memref<32x256xf32, #tpu.memory_space<vmem>>, vector<32x256xf32>,
    return
  }
  func.func @transform_0(%arg0: i32, %arg1: i32) -> (i32, i32) {
    %c0_i32 = arith.constant 0 : i32
    %c0_i32_0 = arith.constant 0 : i32
    return %arg0, %c0_i32 : i32, i32
  }
  func.func @transform_1(%arg0: i32, %arg1: i32) -> (i32, i32) {
    %c0_i32 = arith.constant 0 : i32
    %c0_i32_0 = arith.constant 0 : i32
    %c0_i32_1 = arith.constant 0 : i32
    return %c0_i32, %c0_i32_0 : i32, i32
  }
  func.func @transform_2(%arg0: i32, %arg1: i32) -> (i32, i32) {
    %c0_i32 = arith.constant 0 : i32
    %c0_i32_0 = arith.constant 0 : i32
    return %c0_i32, %arg1 : i32, i32
  }
  func.func @transform_3(%arg0: i32, %arg1: i32) -> (i32, i32) {
    %c0_i32 = arith.constant 0 : i32
    return %arg0, %arg1 : i32, i32
  }
}

module attributes {stable_mosaic.version = 11 : i64} {
  func.func @_swiglu_matmul_resid_kernel(%arg0: i32, %arg1: i32, %arg2: memref<32x256xf32, #tpu.memory_space<vmem>>, %arg3: memref<128x64xf32, #tpu.memory_space<vmem>>, %arg4: memref<32x64xf32, #tpu.memory_space<vmem>>, %arg5: memref<32x64xf32, #tpu.memory_space<vmem>>) attributes {dimension_semantics = [#tpu.dimension_semantics<parallel>, #tpu.dimension_semantics<parallel>], iteration_bounds = array<i64: 1, 1>, scalar_prefetch = 0 : i64, scratch_operands = 0 : i64, tpu.core_type = #tpu.core_type<tc>, window_params = [{transform_indices = @transform_0, window_bounds = array<i64: 32, 256>}, {transform_indices = @transform_1, window_bounds = array<i64: 128, 64>}, {transform_indices = @transform_2, window_bounds = array<i64: 32, 64>}, {transform_indices = @transform_3, window_bounds = array<i64: 32, 64>}]} {
    %c0 = arith.constant 0 : index
    %c0_0 = arith.constant 0 : index
    %0 = vector.load %arg2[%c0, %c0_0] : memref<32x256xf32, #tpu.memory_space<vmem>>, vector<32x256xf32>
    %1 = vector.extract_strided_slice %0 {offsets = [0, 0], sizes = [32, 128], strides = [1, 1]} : vector<32x256xf32> to vector<32x128xf32>
    %2 = vector.extract_strided_slice %0 {offsets = [0, 128], sizes = [32, 128], strides = [1, 1]} : vector<32x256xf32> to vector<32x128xf32>
    %3 = arith.negf %1 : vector<32x128xf32>
    %4 = math.exp %3 : vector<32x128xf32>
    %cst = arith.constant 1.000000e+00 : f32
    %5 = vector.broadcast %cst : f32 to vector<32x128xf32>
    %6 = arith.addf %5, %4 : vector<32x128xf32>
    %7 = arith.divf %5, %6 : vector<32x128xf32>
    %8 = arith.mulf %1, %7 : vector<32x128xf32>
    %9 = arith.mulf %8, %2 : vector<32x128xf32>
    %c0_1 = arith.constant 0 : index
    %c0_2 = arith.constant 0 : index
    %10 = vector.load %arg3[%c0_1, %c0_2] : memref<128x64xf32, #tpu.memory_space<vmem>>, vector<128x64xf32>
    %cst_3 = arith.constant dense<0.000000e+00> : vector<32x64xf32>
    %11 = tpu.matmul %9, %10, %cst_3 {dimension_numbers = #tpu.dot_dimension_numbers<[1], [0], [0], [1], [0, 0, 1, 1], [], []>} : vector<32x128xf32>, vector<128x64xf32>, vector<32x64xf32> -> vector<32x64xf32>
    %c0_4 = arith.constant 0 : index
    %c0_5 = arith.constant 0 : index
    %12 = vector.load %arg4[%c0_4, %c0_5] : memref<32x64xf32, #tpu.memory_space<vmem>>, vector<32x64xf32>
    %13 = arith.addf %11, %12 : vector<32x64xf32>
    %c0_6 = arith.constant 0 : index
    %c0_7 = arith.constant 0 : index
    %14 = vector.load %arg5[%c0_6, %c0_7] : memref<32x64xf32, #tpu.memory_space<vmem>>, vector<32x64xf32>
    tpu.vector_store %arg5[%c0_6, %c0_7], %13 {strides = array<i32>} : memref<32x64xf32, #tpu.memory_space<vmem>>, vector<32x64xf32>,
    return
  }
  func.func @transform_0(%arg0: i32, %arg1: i32) -> (i32, i32) {
    %c0_i32 = arith.constant 0 : i32
    %c0_i32_0 = arith.constant 0 : i32
    return %arg0, %c0_i32 : i32, i32
  }
  func.func @transform_1(%arg0: i32, %arg1: i32) -> (i32, i32) {
    %c0_i32 = arith.constant 0 : i32
    %c0_i32_0 = arith.constant 0 : i32
    return %c0_i32, %arg1 : i32, i32
  }
  func.func @transform_2(%arg0: i32, %arg1: i32) -> (i32, i32) {
    %c0_i32 = arith.constant 0 : i32
    return %arg0, %arg1 : i32, i32
  }
  func.func @transform_3(%arg0: i32, %arg1: i32) -> (i32, i32) {
    %c0_i32 = arith.constant 0 : i32
    return %arg0, %arg1 : i32, i32
  }
}

</mosaic_0001>

<bundles_post_ra>
// kernel: transformer_block_forward.5
= control target key start
LH: loop header
LB: loop body
LE: loop exit
PB: predicated region body
PF: predicated region fallthrough
CT: control target
= control target key end

     0   :  { %8 = vsyncpa [#allocation3], 0  ;;  %s272_s12 = smov [#allocation2]   ;;  %s379_s0 = inlined_call_operand.vmem [shape: f32[32,64], index: 0, kind: input, shape index: {}]   ;;  %s380_s1 = inlined_call_operand.vmem [shape: f32[1,64], index: 1, kind: input, shape index: {}]   ;;  %s381_s2 = inlined_call_operand.hbm [shape: f32[64,192], index: 2, kind: input, shape index: {}]   ;;  %s382_s3 = inlined_call_operand.vmem [shape: f32[32,192], index: 3, kind: output, shape index: {}]  }
   0x1   :  { %s18_s13 = sshll.u32 %s272_s12, 4  ;;  %s248_s16 = scalar_lea.hbm %s381_s2, 2048  ;;  %s19_s13 = int_to_ptr.vmem [resolvable:$true] %s18_s13 }
   0x2   :  { %p249_p0 = scmp.ne.s32.totalorder %s381_s2, %s248_s16  ;;  %p252_p1 = scmp.lt.u32.totalorder %s248_s16, %s381_s2 }
   0x4   :  { %p254_p2 = pnand %p252_p1, %p249_p0 }
   0x6   :  { %257 = shalt.err (!%p254_p2)
}
   0x7   :  { %s258_s21 = scalar_lea.vmem %s19_s13, 2048  ;;  %p263_p4 = scmp.lt.s32.totalorder %s19_s13, %s19_s13 }
   0x8   :  { %p259_p3 = scmp.ne.s32.totalorder %s19_s13, %s258_s21  ;;  %p264_p5 = scmp.lt.s32.totalorder %s258_s21, %s258_s21 }
   0xa   :  { %p265_p6 = por %p264_p5, %p263_p4 }
   0xc   :  { %p266_p7 = pnand %p265_p6, %p259_p3 }
   0xe   :  { %269 = shalt.err (!%p266_p7)
}
   0xf   :  { %s273_s22 = smov 256   ;;  %s274_s23 = smov 16  }
  0x10   :  { %24 = dma.hbm_to_vmem [thread:$0]  %s381_s2, 2048, %s19_s13, [#allocation3], %s273_s22, %s273_s22, %s274_s23  }
  0x11   :  { %270 = dma.done.wait [#allocation3], 2048  }
  0x12   :  { %271 = vsyncadd [#allocation3], 4294965248  ;;  %v311_v0 = vld [vmem:[%s379_s0] sm:$0xff]  ;;  %vm37_vm0 = vcmask 523264   ;;  %v316_v1 = vld [vmem:[%s379_s0 + $0x8] sm:$0xff]  ;;  %v275_v36 = vmov 0.0  }
  0x13   :  { %v33_v2 = vmul.f32 %v311_v0, %v311_v0  ;;  %v34_v3 = vmul.f32 %v316_v1, %v316_v1  ;;  %v325_v4 = vld [vmem:[%s379_s0 + $0x10] sm:$0xff]  ;;  %v330_v5 = vld [vmem:[%s379_s0 + $0x18] sm:$0xff]  ;;  %v78_v12 = vld [vmem:[#allocation2 + $0x8] sm:$0xff]  ;;  %169 = vmatprep.mubr.f32.mxu0 %v275_v36  ;;  %181 = vmatprep.mubr.f32.mxu1 %v275_v36 }
  0x14   :  { %v35_v6 = vmul.f32 %v325_v4, %v325_v4  ;;  %v36_v7 = vmul.f32 %v330_v5, %v330_v5  ;;  %v80_v13 = vld [vmem:[#allocation2 + $0x18] sm:$0xff]  ;;  %v77_v15 = vld [vmem:[#allocation2] sm:$0xff]  ;;  %v79_v16 = vld [vmem:[#allocation2 + $0x10] sm:$0xff] }
  0x15   :  { %v38_v8 = vsel %vm37_vm0, %v33_v2, 0.0  ;;  %v41_v9 = vsel %vm37_vm0, %v34_v3, 0.0  ;;  %v212_v14 = vpack.c.bf16 %v80_v13, %v78_v12  ;;  %v214_v17 = vpack.c.bf16 %v79_v16, %v77_v15  ;;  %v82_v18 = vld [vmem:[#allocation2 + $0x28] sm:$0xff]  ;;  %v84_v19 = vld [vmem:[#allocation2 + $0x38] sm:$0xff]  ;;  %v81_v21 = vld [vmem:[#allocation2 + $0x20] sm:$0xff] }
  0x16   :  { %39 = vadd.xlane.f32.xlu0 %v38_v8  ;;  %42 = vadd.xlane.f32.xlu1 %v41_v9  ;;  %v44_v10 = vsel %vm37_vm0, %v35_v6, 0.0  ;;  %v47_v11 = vsel %vm37_vm0, %v36_v7, 0.0  ;;  %v216_v20 = vpack.c.bf16 %v84_v19, %v82_v18  ;;  %v83_v22 = vld [vmem:[#allocation2 + $0x30] sm:$0xff]  ;;  %v86_v24 = vld [vmem:[#allocation2 + $0x48] sm:$0xff]  ;;  %v88_v25 = vld [vmem:[#allocation2 + $0x58] sm:$0xff] }
  0x17   :  { %213 = vmatprep.subr.bf16.mxu0 %v212_v14  ;;  %228 = vmatprep.subr.bf16.mxu1 %v212_v14  ;;  %v218_v23 = vpack.c.bf16 %v83_v22, %v81_v21  ;;  %v220_v26 = vpack.c.bf16 %v88_v25, %v86_v24  ;;  %v85_v27 = vld [vmem:[#allocation2 + $0x40] sm:$0xff]  ;;  %v87_v28 = vld [vmem:[#allocation2 + $0x50] sm:$0xff]  ;;  %v90_v30 = vld [vmem:[#allocation2 + $0x68] sm:$0xff] }
  0x18   :  { %215 = vmatpush1.bf16.msra.mxu0 %v214_v17  ;;  %232 = vmatpush1.bf16.msra.mxu1 %v214_v17  ;;  %v222_v29 = vpack.c.bf16 %v87_v28, %v85_v27  ;;  %v92_v31 = vld [vmem:[#allocation2 + $0x78] sm:$0xff]  ;;  %v89_v32 = vld [vmem:[#allocation2 + $0x60] sm:$0xff]  ;;  %v91_v34 = vld [vmem:[#allocation2 + $0x70] sm:$0xff] }
  0x19   :  { %217 = vmatprep.subr.bf16.mxu0 %v216_v20  ;;  %229 = vmatprep.subr.bf16.mxu1 %v216_v20  ;;  %v224_v33 = vpack.c.bf16 %v92_v31, %v90_v30  ;;  %v226_v35 = vpack.c.bf16 %v91_v34, %v89_v32  ;;  %v207_v49 = vld [vmem:[%s380_s1] ss:$0 sm:$0xff] }
  0x1a   :  { %45 = vadd.xlane.f32.xlu0 %v44_v10  ;;  %48 = vadd.xlane.f32.xlu1 %v47_v11  ;;  %v61_v50 = vmul.f32 %v207_v49, %v311_v0  ;;  %v62_v51 = vmul.f32 %v207_v49, %v316_v1  ;;  %v63_v54 = vmul.f32 %v207_v49, %v325_v4 }
  0x1b   :  { %v64_v56 = vmul.f32 %v207_v49, %v330_v5 }
  0x1c   :  { %219 = vmatpush1.bf16.msra.mxu0 %v218_v23  ;;  %233 = vmatpush1.bf16.msra.mxu1 %v218_v23 }
  0x1d   :  { %221 = vmatprep.subr.bf16.mxu0 %v220_v26  ;;  %230 = vmatprep.subr.bf16.mxu1 %v220_v26 }
  0x20   :  { %223 = vmatpush1.bf16.msra.mxu0 %v222_v29  ;;  %234 = vmatpush1.bf16.msra.mxu1 %v222_v29 }
  0x21   :  { %225 = vmatprep.subr.bf16.mxu0 %v224_v33  ;;  %231 = vmatprep.subr.bf16.mxu1 %v224_v33 }
  0x24   :  { %227 = vmatpush1.bf16.msra.mxu0 %v226_v35  ;;  %235 = vmatpush1.bf16.msra.mxu1 %v226_v35 }
  0xa3   :  { %v40_v37 = vpop.xlane.xlu0 %39  ;;  %v43_v38 = vpop.xlane.xlu1 %42 }
  0xa4   :  { %v51_v39 = vmul.f32 0.015625, %v40_v37  ;;  %v52_v40 = vmul.f32 0.015625, %v43_v38 }
  0xa6   :  { %v65_v41 = vadd.f32 1e-05, %v51_v39  ;;  %v66_v42 = vadd.f32 1e-05, %v52_v40 }
  0xa7   :  { %v46_v43 = vpop.xlane.xlu0 %45  ;;  %v49_v44 = vpop.xlane.xlu1 %48 }
  0xa8   :  { %240 = vrsqrt.f32 %v65_v41  ;;  %v53_v45 = vmul.f32 0.015625, %v46_v43  ;;  %v54_v46 = vmul.f32 0.015625, %v49_v44 }
  0xa9   :  { %242 = vrsqrt.f32 %v66_v42 }
  0xaa   :  { %v67_v47 = vadd.f32 1e-05, %v53_v45  ;;  %v68_v48 = vadd.f32 1e-05, %v54_v46 }
  0xac   :  { %244 = vrsqrt.f32 %v67_v47 }
  0xad   :  { %246 = vrsqrt.f32 %v68_v48 }
  0xb2   :  { %v241_v52 = vpop.eup %240 }
  0xb3   :  { %v243_v53 = vpop.eup %242  ;;  %v73_v55 = vmul.f32 %v241_v52, %v61_v50 }
  0xb4   :  { %v74_v57 = vmul.f32 %v243_v53, %v62_v51 }
  0xb5   :  { %208 = vmatmul.mubr.msk.f32.vlgmr.msra.gmra.mrb[0].mxu0 %vm37_vm0, %v73_v55 }
  0xb6   :  { %v245_v58 = vpop.eup %244  ;;  %175 = vmatprep.mubr.f32.mxu0 %v275_v36 }
  0xb7   :  { %v247_v59 = vpop.eup %246  ;;  %v75_v60 = vmul.f32 %v245_v58, %v63_v54 }
  0xb8   :  { %v76_v61 = vmul.f32 %v247_v59, %v64_v56 }
  0xb9   :  { %209 = vmatmul.mubr.msk.f32.gmra.mrb[2].mxu0 %vm37_vm0, %v74_v57  ;;  %210 = vmatmul.mubr.msk.f32.vlgmr.msra.gmra.mrb[0].mxu1 %vm37_vm0, %v75_v60 }
  0xba   :  { %187 = vmatprep.mubr.f32.mxu1 %v275_v36 }
  0xbd   :  { %211 = vmatmul.mubr.msk.f32.gmra.mrb[2].mxu1 %vm37_vm0, %v76_v61 }
 0x188   :  { %v171_v62 = vpop.f32.mrb[0].mxu0 }
 0x189   :  { %194 = vst [vmem:[%s382_s3] sm:$0xff] %v171_v62  ;;  %v173_v63 = vpop.f32.mrb[1].mxu0 }
 0x18a   :  { %195 = vst.msk [vmem:[%s382_s3 + $0x8] sm:$0xff] %vm37_vm0, %v173_v63 }
 0x18c   :  { %v177_v0 = vpop.f32.mrb[2].mxu0  ;;  %v183_v1 = vpop.f32.mrb[0].mxu1 }
 0x18d   :  { %196 = vst [vmem:[%s382_s3 + $0x10] sm:$0xff] %v177_v0  ;;  %198 = vst [vmem:[%s382_s3 + $0x20] sm:$0xff] %v183_v1  ;;  %v179_v2 = vpop.f32.mrb[3].mxu0  ;;  %v185_v3 = vpop.f32.mrb[1].mxu1 }
 0x18e   :  { %197 = vst.msk [vmem:[%s382_s3 + $0x18] sm:$0xff] %vm37_vm0, %v179_v2  ;;  %199 = vst.msk [vmem:[%s382_s3 + $0x28] sm:$0xff] %vm37_vm0, %v185_v3 }
 0x190   :  { %v189_v4 = vpop.f32.mrb[2].mxu1 }
 0x191   :  { %200 = vst [vmem:[%s382_s3 + $0x30] sm:$0xff] %v189_v4  ;;  %v191_v5 = vpop.f32.mrb[3].mxu1 }
 0x192   :  { %201 = vst.msk [vmem:[%s382_s3 + $0x38] sm:$0xff] %vm37_vm0, %v191_v5 }
 0x193   :  { %206 = vsyncpa [#allocation3], 1 }

// kernel: transformer_block_forward.7
= control target key start
LH: loop header
LB: loop body
LE: loop exit
PB: predicated region body
PF: predicated region fallthrough
CT: control target
= control target key end

     0   :  { %vm30_vm0 = vcmask 523264   ;;  %s286_s1 = inlined_call_operand.vmem [shape: f32[64,64], index: 1, kind: input, shape index: {}]   ;;  %s287_s0 = inlined_call_operand.vmem [shape: f32[32,64], index: 0, kind: input, shape index: {}]   ;;  %s288_s2 = inlined_call_operand.vmem [shape: f32[32,64], index: 2, kind: input, shape index: {}]   ;;  %s289_s3 = inlined_call_operand.vmem [shape: f32[32,64], index: 3, kind: output, shape index: {}]  }
   0x1   :  { %v18_v0 = vld [vmem:[%s286_s1] sm:$0xff]  ;;  %v19_v1 = vld [vmem:[%s286_s1 + $0x8] sm:$0xff]  ;;  %v20_v2 = vld [vmem:[%s286_s1 + $0x10] sm:$0xff] }
   0x2   :  { %v174_v3 = vpack.c.bf16 %v19_v1, %v18_v0  ;;  %v21_v4 = vld [vmem:[%s286_s1 + $0x18] sm:$0xff]  ;;  %v22_v6 = vld [vmem:[%s286_s1 + $0x20] sm:$0xff]  ;;  %v23_v7 = vld [vmem:[%s286_s1 + $0x28] sm:$0xff] }
   0x3   :  { %v178_v5 = vpack.c.bf16 %v21_v4, %v20_v2  ;;  %v14_v8 = vld [vmem:[%s287_s0] sm:$0xff]  ;;  %v16_v9 = vld [vmem:[%s287_s0 + $0x10] sm:$0xff]  ;;  %v182_v10 = vpack.c.bf16 %v23_v7, %v22_v6  ;;  %v25_v12 = vld [vmem:[%s286_s1 + $0x38] sm:$0xff] }
   0x4   :  { %175 = vmatprep.subr.bf16.mxu0 %v174_v3  ;;  %190 = vmatprep.subr.bf16.mxu1 %v174_v3  ;;  %v24_v11 = vld [vmem:[%s286_s1 + $0x30] sm:$0xff]  ;;  %v15_v14 = vld [vmem:[%s287_s0 + $0x8] sm:$0xff]  ;;  %v17_v15 = vld [vmem:[%s287_s0 + $0x18] sm:$0xff] }
   0x5   :  { %177 = vmatpush3.bf16.msra.mxu0 %v174_v3  ;;  %194 = vmatpush3.bf16.msra.mxu1 %v174_v3  ;;  %v186_v13 = vpack.c.bf16 %v25_v12, %v24_v11  ;;  %v27_v16 = vld [vmem:[%s288_s2 + $0x8] sm:$0xff]  ;;  %v29_v17 = vld [vmem:[%s288_s2 + $0x18] sm:$0xff]  ;;  %v26_v18 = vld [vmem:[%s288_s2] sm:$0xff] }
   0x6   :  { %179 = vmatprep.subr.bf16.mxu0 %v178_v5  ;;  %191 = vmatprep.subr.bf16.mxu1 %v178_v5  ;;  %v28_v19 = vld [vmem:[%s288_s2 + $0x10] sm:$0xff] }
   0x7   :  { %168 = vmatprep.mubr.msk.f32.mxu0 %vm30_vm0, %v14_v8  ;;  %171 = vmatprep.mubr.msk.f32.mxu1 %vm30_vm0, %v16_v9 }
   0x9   :  { %181 = vmatpush3.bf16.msra.mxu0 %v178_v5  ;;  %195 = vmatpush3.bf16.msra.mxu1 %v178_v5 }
   0xa   :  { %183 = vmatprep.subr.bf16.mxu0 %v182_v10  ;;  %192 = vmatprep.subr.bf16.mxu1 %v182_v10 }
   0xd   :  { %185 = vmatpush3.bf16.msra.mxu0 %v182_v10  ;;  %196 = vmatpush3.bf16.msra.mxu1 %v182_v10 }
   0xe   :  { %187 = vmatprep.subr.bf16.mxu0 %v186_v13  ;;  %193 = vmatprep.subr.bf16.mxu1 %v186_v13 }
  0x11   :  { %189 = vmatpush3.bf16.msra.mxu0 %v186_v13  ;;  %197 = vmatpush3.bf16.msra.mxu1 %v186_v13 }
  0x14   :  { %169 = vmatmul.mubr.msk.f32.vlgmr.msra.gmra.mrb[0].mxu0 %vm30_vm0, %v15_v14  ;;  %172 = vmatmul.mubr.msk.f32.vlgmr.msra.gmra.mrb[0].mxu1 %vm30_vm0, %v17_v15 }
  0xe7   :  { %v170_v20 = vpop.f32.mrb[0].mxu0  ;;  %v173_v21 = vpop.f32.mrb[0].mxu1 }
  0xe8   :  { %v115_v22 = vadd.f32 %v170_v20, %v27_v16  ;;  %v125_v23 = vadd.f32 %v173_v21, %v29_v17  ;;  %v109_v24 = vpop.f32.mrb[1].mxu0  ;;  %v119_v25 = vpop.f32.mrb[1].mxu1 }
  0xe9   :  { %v110_v26 = vadd.f32 %v109_v24, %v26_v18  ;;  %v120_v27 = vadd.f32 %v119_v25, %v28_v19 }
  0xea   :  { %129 = vst.msk [vmem:[%s289_s3 + $0x8] sm:$0xff] %vm30_vm0, %v115_v22  ;;  %131 = vst.msk [vmem:[%s289_s3 + $0x18] sm:$0xff] %vm30_vm0, %v125_v23 }
  0xeb   :  { %128 = vst.msk [vmem:[%s289_s3] sm:$0xff] %vm30_vm0, %v110_v26  ;;  %130 = vst.msk [vmem:[%s289_s3 + $0x10] sm:$0xff] %vm30_vm0, %v120_v27 }

// kernel: transformer_block_forward.9
= control target key start
LH: loop header
LB: loop body
LE: loop exit
PB: predicated region body
PF: predicated region fallthrough
CT: control target
= control target key end

     0   :  { %s469_s0 = inlined_call_operand.vmem [shape: f32[32,256], index: 0, kind: input, shape index: {}]   ;;  %s470_s1 = inlined_call_operand.vmem [shape: f32[128,64], index: 1, kind: input, shape index: {}]   ;;  %s471_s2 = inlined_call_operand.vmem [shape: f32[32,64], index: 2, kind: input, shape index: {}]   ;;  %s472_s3 = inlined_call_operand.hbm [shape: f32[32,64], index: 3, kind: output, shape index: {}]  }
   0x1   :  { %v55_v0 = vld [vmem:[%s470_s1] sm:$0xff]  ;;  %v56_v1 = vld [vmem:[%s470_s1 + $0x8] sm:$0xff]  ;;  %v57_v2 = vld [vmem:[%s470_s1 + $0x10] sm:$0xff] }
   0x2   :  { %v243_v3 = vpack.c.bf16 %v56_v1, %v55_v0  ;;  %v58_v4 = vld [vmem:[%s470_s1 + $0x18] sm:$0xff]  ;;  %v59_v6 = vld [vmem:[%s470_s1 + $0x20] sm:$0xff]  ;;  %v60_v7 = vld [vmem:[%s470_s1 + $0x28] sm:$0xff] }
   0x3   :  { %v247_v5 = vpack.c.bf16 %v58_v4, %v57_v2  ;;  %v251_v8 = vpack.c.bf16 %v60_v7, %v59_v6  ;;  %v61_v9 = vld [vmem:[%s470_s1 + $0x30] sm:$0xff]  ;;  %v381_v10 = vld [vmem:[%s469_s0] sm:$0xff]  ;;  %v62_v11 = vld [vmem:[%s470_s1 + $0x38] sm:$0xff] }
   0x4   :  { %244 = vmatprep.subr.bf16.mxu0 %v243_v3  ;;  %275 = vmatprep.subr.bf16.mxu1 %v243_v3  ;;  %v181_v12 = vmul.f32 -1.442695, %v381_v10  ;;  %v390_v13 = vld [vmem:[%s469_s0 + $0x20] sm:$0xff]  ;;  %v395_v14 = vld [vmem:[%s469_s0 + $0x10] sm:$0xff] }
   0x5   :  { %246 = vmatpush3.bf16.msra.mxu0 %v243_v3  ;;  %283 = vmatpush3.bf16.msra.mxu1 %v243_v3  ;;  %v183_v15 = vmul.f32 -1.442695, %v390_v13  ;;  %v182_v16 = vmul.f32 -1.442695, %v395_v14  ;;  %v402_v17 = vld [vmem:[%s469_s0 + $0x30] sm:$0xff] }
   0x6   :  { %248 = vmatprep.subr.bf16.mxu0 %v247_v5  ;;  %276 = vmatprep.subr.bf16.mxu1 %v247_v5  ;;  %294 = vpow2.f32 %v181_v12  ;;  %v184_v18 = vmul.f32 -1.442695, %v402_v17 }
   0x9   :  { %250 = vmatpush3.bf16.msra.mxu0 %v247_v5  ;;  %284 = vmatpush3.bf16.msra.mxu1 %v247_v5 }
   0xa   :  { %8 = vsyncpa [#allocation3], 0  ;;  %252 = vmatprep.subr.bf16.mxu0 %v251_v8  ;;  %277 = vmatprep.subr.bf16.mxu1 %v251_v8  ;;  %v255_v19 = vpack.c.bf16 %v62_v11, %v61_v9  ;;  %296 = vpow2.f32 %v183_v15  ;;  %v63_v20 = vld [vmem:[%s470_s1 + $0x40] sm:$0xff]  ;;  %v64_v21 = vld [vmem:[%s470_s1 + $0x48] sm:$0xff]  ;;  %vm160_vm0 = vcmask 523264  }
   0xb   :  { %298 = vpow2.f32 %v182_v16  ;;  %v259_v22 = vpack.c.bf16 %v64_v21, %v63_v20  ;;  %v65_v23 = vld [vmem:[%s470_s1 + $0x50] sm:$0xff]  ;;  %v66_v24 = vld [vmem:[%s470_s1 + $0x58] sm:$0xff]  ;;  %v67_v27 = vld [vmem:[%s470_s1 + $0x60] sm:$0xff] }
   0xc   :  { %300 = vpow2.f32 %v184_v18  ;;  %v263_v25 = vpack.c.bf16 %v66_v24, %v65_v23  ;;  %v68_v28 = vld [vmem:[%s470_s1 + $0x68] sm:$0xff]  ;;  %v69_v36 = vld [vmem:[%s470_s1 + $0x70] sm:$0xff]  ;;  %v70_v37 = vld [vmem:[%s470_s1 + $0x78] sm:$0xff] }
   0xd   :  { %254 = vmatpush3.bf16.msra.mxu0 %v251_v8  ;;  %285 = vmatpush3.bf16.msra.mxu1 %v251_v8  ;;  %v267_v34 = vpack.c.bf16 %v68_v28, %v67_v27  ;;  %v271_v39 = vpack.c.bf16 %v70_v37, %v69_v36  ;;  %v16_v41 = vld [vmem:[%s469_s0 + $0x8] sm:$0xff]  ;;  %v18_v47 = vld [vmem:[%s469_s0 + $0x18] sm:$0xff]  ;;  %v71_v58 = vld [vmem:[%s471_s2] sm:$0xff] }
   0xe   :  { %256 = vmatprep.subr.bf16.mxu0 %v255_v19  ;;  %278 = vmatprep.subr.bf16.mxu1 %v255_v19  ;;  %v20_v44 = vld [vmem:[%s469_s0 + $0x28] sm:$0xff]  ;;  %v22_v51 = vld [vmem:[%s469_s0 + $0x38] sm:$0xff]  ;;  %s334_s0 = smov [#allocation2]   ;;  %v73_v60 = vld [vmem:[%s471_s2 + $0x10] sm:$0xff] }
   0xf   :  { %v72_v56 = vld [vmem:[%s471_s2 + $0x8] sm:$0xff]  ;;  %v74_v57 = vld [vmem:[%s471_s2 + $0x18] sm:$0xff]  ;;  %s170_s11 = sshll.u32 %s334_s0, 4  ;;  %s171_s11 = int_to_ptr.vmem [resolvable:$true] %s170_s11 }
  0x10   :  { %v295_v26 = vpop.eup %294  ;;  %s310_s14 = scalar_lea.vmem %s171_s11, 512  ;;  %p315_p1 = scmp.lt.s32.totalorder %s171_s11, %s171_s11 }
  0x11   :  { %258 = vmatpush3.bf16.msra.mxu0 %v255_v19  ;;  %286 = vmatpush3.bf16.msra.mxu1 %v255_v19  ;;  %v35_v30 = vadd.f32 1.0, %v295_v26  ;;  %p311_p0 = scmp.ne.s32.totalorder %s171_s11, %s310_s14  ;;  %p316_p2 = scmp.lt.s32.totalorder %s310_s14, %s310_s14 }
  0x12   :  { %260 = vmatprep.subr.bf16.mxu0 %v259_v22  ;;  %279 = vmatprep.subr.bf16.mxu1 %v259_v22 }
  0x13   :  { %302 = vrcp.f32 %v35_v30  ;;  %p317_p3 = por %p316_p2, %p315_p1 }
  0x14   :  { %v297_v29 = vpop.eup %296 }
  0x15   :  { %v299_v31 = vpop.eup %298  ;;  %262 = vmatpush3.bf16.msra.mxu0 %v259_v22  ;;  %287 = vmatpush3.bf16.msra.mxu1 %v259_v22  ;;  %v37_v32 = vadd.f32 1.0, %v297_v29  ;;  %p318_p4 = pnand %p317_p3, %p311_p0 }
  0x16   :  { %v301_v33 = vpop.eup %300  ;;  %264 = vmatprep.subr.bf16.mxu0 %v263_v25  ;;  %280 = vmatprep.subr.bf16.mxu1 %v263_v25  ;;  %v36_v35 = vadd.f32 1.0, %v299_v31 }
  0x17   :  { %304 = vrcp.f32 %v37_v32  ;;  %v38_v38 = vadd.f32 1.0, %v301_v33 }
  0x18   :  { %306 = vrcp.f32 %v36_v35 }
  0x19   :  { %266 = vmatpush3.bf16.msra.mxu0 %v263_v25  ;;  %288 = vmatpush3.bf16.msra.mxu1 %v263_v25  ;;  %308 = vrcp.f32 %v38_v38 }
  0x1a   :  { %268 = vmatprep.subr.bf16.mxu0 %v267_v34  ;;  %281 = vmatprep.subr.bf16.mxu1 %v267_v34 }
  0x1d   :  { %270 = vmatpush3.bf16.msra.mxu0 %v267_v34  ;;  %289 = vmatpush3.bf16.msra.mxu1 %v267_v34  ;;  %v303_v40 = vpop.eup %302 }
  0x1e   :  { %272 = vmatprep.subr.bf16.mxu0 %v271_v39  ;;  %282 = vmatprep.subr.bf16.mxu1 %v271_v39  ;;  %v47_v43 = vmul.f32 %v303_v40, %v381_v10 }
  0x20   :  { %v51_v49 = vmul.f32 %v47_v43, %v16_v41 }
  0x21   :  { %v305_v42 = vpop.eup %304  ;;  %274 = vmatpush3.bf16.msra.mxu0 %v271_v39  ;;  %290 = vmatpush3.bf16.msra.mxu1 %v271_v39 }
  0x22   :  { %v307_v45 = vpop.eup %306  ;;  %v49_v46 = vmul.f32 %v305_v42, %v390_v13  ;;  %237 = vmatprep.mubr.f32.mxu0 %v51_v49 }
  0x23   :  { %v309_v48 = vpop.eup %308  ;;  %v48_v50 = vmul.f32 %v307_v45, %v395_v14 }
  0x24   :  { %v53_v52 = vmul.f32 %v49_v46, %v20_v44  ;;  %v50_v53 = vmul.f32 %v309_v48, %v402_v17 }
  0x25   :  { %v52_v54 = vmul.f32 %v48_v50, %v18_v47 }
  0x26   :  { %240 = vmatprep.mubr.f32.mxu1 %v53_v52  ;;  %v54_v55 = vmul.f32 %v50_v53, %v22_v51 }
  0x27   :  { %238 = vmatmul.mubr.f32.vlgmr.msra.gmra.mrb[0].mxu0 %v52_v54 }
  0x28   :  { %241 = vmatmul.mubr.f32.vlgmr.msra.gmra.mrb[0].mxu1 %v54_v55 }
  0xfa   :  { %v239_v59 = vpop.f32.mrb[0].mxu0 }
  0xfb   :  { %v147_v61 = vadd.f32 %v239_v59, %v72_v56  ;;  %v242_v62 = vpop.f32.mrb[0].mxu1  ;;  %v141_v63 = vpop.f32.mrb[1].mxu0 }
  0xfc   :  { %v157_v0 = vadd.f32 %v242_v62, %v74_v57  ;;  %v142_v1 = vadd.f32 %v141_v63, %v71_v58  ;;  %v151_v2 = vpop.f32.mrb[1].mxu1 }
  0xfd   :  { %162 = vst.msk [vmem:[#allocation2 + $0x8] sm:$0xff] %vm160_vm0, %v147_v61  ;;  %v152_v3 = vadd.f32 %v151_v2, %v73_v60 }
  0xfe   :  { %164 = vst.msk [vmem:[#allocation2 + $0x18] sm:$0xff] %vm160_vm0, %v157_v0  ;;  %161 = vst.msk [vmem:[#allocation2] sm:$0xff] %vm160_vm0, %v142_v1 }
  0xff   :  { %163 = vst.msk [vmem:[#allocation2 + $0x10] sm:$0xff] %vm160_vm0, %v152_v3 }
 0x100   :  { %321 = shalt.err (!%p318_p4)
}
 0x101   :  { %s322_s16 = scalar_lea.hbm %s472_s3, 512 }
 0x102   :  { %p323_p5 = scmp.ne.s32.totalorder %s472_s3, %s322_s16  ;;  %p326_p6 = scmp.lt.u32.totalorder %s322_s16, %s472_s3 }
 0x104   :  { %p328_p7 = pnand %p326_p6, %p323_p5 }
 0x106   :  { %331 = shalt.err (!%p328_p7)
}
 0x107   :  { %s335_s21 = smov 128   ;;  %s336_s22 = smov 8  }
 0x108   :  { %176 = dma.vmem_to_hbm [thread:$0]  %s171_s11, 512, %s472_s3, [#allocation3], %s335_s21, %s335_s21, %s336_s22  }
 0x109   :  { %332 = dma.done.wait [#allocation3], 512  }
 0x10a   :  { %333 = vsyncadd [#allocation3], 4294966784 }
 0x10b   :  { %180 = vsyncpa [#allocation3], 1 }

// kernel: transformer_block_forward.8
= control target key start
LH: loop header
LB: loop body
LE: loop exit
PB: predicated region body
PF: predicated region fallthrough
CT: control target
= control target key end

     0   :  { %vm23_vm0 = vcmask 523264   ;;  %v230_v36 = vmov 0.0   ;;  %s366_s0 = inlined_call_operand.vmem [shape: f32[32,64], index: 0, kind: input, shape index: {}]   ;;  %s367_s2 = inlined_call_operand.vmem [shape: f32[64,256], index: 2, kind: input, shape index: {}]   ;;  %s368_s1 = inlined_call_operand.vmem [shape: f32[1,64], index: 1, kind: input, shape index: {}]   ;;  %s369_s3 = inlined_call_operand.vmem [shape: f32[32,256], index: 3, kind: output, shape index: {}]  }
   0x1   :  { %v254_v0 = vld [vmem:[%s366_s0] sm:$0xff]  ;;  %v259_v1 = vld [vmem:[%s366_s0 + $0x8] sm:$0xff]  ;;  %v268_v4 = vld [vmem:[%s366_s0 + $0x10] sm:$0xff]  ;;  %155 = vmatprep.mubr.f32.mxu0 %v230_v36  ;;  %167 = vmatprep.mubr.f32.mxu1 %v230_v36 }
   0x2   :  { %v19_v2 = vmul.f32 %v254_v0, %v254_v0  ;;  %v20_v3 = vmul.f32 %v259_v1, %v259_v1  ;;  %v273_v5 = vld [vmem:[%s366_s0 + $0x18] sm:$0xff]  ;;  %v21_v6 = vmul.f32 %v268_v4, %v268_v4  ;;  %v64_v12 = vld [vmem:[%s367_s2 + $0x8] sm:$0xff]  ;;  %v63_v15 = vld [vmem:[%s367_s2] sm:$0xff] }
   0x3   :  { %v22_v7 = vmul.f32 %v273_v5, %v273_v5  ;;  %v66_v13 = vld [vmem:[%s367_s2 + $0x18] sm:$0xff]  ;;  %v65_v16 = vld [vmem:[%s367_s2 + $0x10] sm:$0xff]  ;;  %v68_v18 = vld [vmem:[%s367_s2 + $0x28] sm:$0xff] }
   0x4   :  { %v24_v8 = vsel %vm23_vm0, %v19_v2, 0.0  ;;  %v27_v9 = vsel %vm23_vm0, %v20_v3, 0.0  ;;  %v30_v10 = vsel %vm23_vm0, %v21_v6, 0.0  ;;  %v197_v14 = vpack.c.bf16 %v66_v13, %v64_v12  ;;  %v70_v19 = vld [vmem:[%s367_s2 + $0x38] sm:$0xff]  ;;  %v67_v21 = vld [vmem:[%s367_s2 + $0x20] sm:$0xff]  ;;  %v69_v22 = vld [vmem:[%s367_s2 + $0x30] sm:$0xff] }
   0x5   :  { %25 = vadd.xlane.f32.xlu0 %v24_v8  ;;  %28 = vadd.xlane.f32.xlu1 %v27_v9  ;;  %v33_v11 = vsel %vm23_vm0, %v22_v7, 0.0  ;;  %v199_v17 = vpack.c.bf16 %v65_v16, %v63_v15  ;;  %v201_v20 = vpack.c.bf16 %v70_v19, %v68_v18  ;;  %v203_v23 = vpack.c.bf16 %v69_v22, %v67_v21  ;;  %v72_v24 = vld [vmem:[%s367_s2 + $0x48] sm:$0xff]  ;;  %v74_v25 = vld [vmem:[%s367_s2 + $0x58] sm:$0xff]  ;;  %v71_v27 = vld [vmem:[%s367_s2 + $0x40] sm:$0xff] }
   0x6   :  { %198 = vmatprep.subr.bf16.mxu0 %v197_v14  ;;  %213 = vmatprep.subr.bf16.mxu1 %v197_v14  ;;  %v205_v26 = vpack.c.bf16 %v74_v25, %v72_v24  ;;  %v73_v28 = vld [vmem:[%s367_s2 + $0x50] sm:$0xff]  ;;  %v76_v30 = vld [vmem:[%s367_s2 + $0x68] sm:$0xff]  ;;  %v78_v31 = vld [vmem:[%s367_s2 + $0x78] sm:$0xff] }
   0x7   :  { %200 = vmatpush1.bf16.msra.mxu0 %v199_v17  ;;  %217 = vmatpush1.bf16.msra.mxu1 %v199_v17  ;;  %v207_v29 = vpack.c.bf16 %v73_v28, %v71_v27  ;;  %v75_v32 = vld [vmem:[%s367_s2 + $0x60] sm:$0xff]  ;;  %v209_v33 = vpack.c.bf16 %v78_v31, %v76_v30  ;;  %v77_v34 = vld [vmem:[%s367_s2 + $0x70] sm:$0xff] }
   0x8   :  { %202 = vmatprep.subr.bf16.mxu0 %v201_v20  ;;  %214 = vmatprep.subr.bf16.mxu1 %v201_v20  ;;  %v211_v35 = vpack.c.bf16 %v77_v34, %v75_v32  ;;  %v192_v49 = vld [vmem:[%s368_s1] ss:$0 sm:$0xff] }
   0x9   :  { %31 = vadd.xlane.f32.xlu0 %v30_v10  ;;  %34 = vadd.xlane.f32.xlu1 %v33_v11  ;;  %v47_v50 = vmul.f32 %v192_v49, %v254_v0  ;;  %v48_v51 = vmul.f32 %v192_v49, %v259_v1  ;;  %v49_v54 = vmul.f32 %v192_v49, %v268_v4 }
   0xa   :  { %v50_v56 = vmul.f32 %v192_v49, %v273_v5 }
   0xb   :  { %204 = vmatpush1.bf16.msra.mxu0 %v203_v23  ;;  %218 = vmatpush1.bf16.msra.mxu1 %v203_v23 }
   0xc   :  { %206 = vmatprep.subr.bf16.mxu0 %v205_v26  ;;  %215 = vmatprep.subr.bf16.mxu1 %v205_v26 }
   0xf   :  { %208 = vmatpush1.bf16.msra.mxu0 %v207_v29  ;;  %219 = vmatpush1.bf16.msra.mxu1 %v207_v29 }
  0x10   :  { %210 = vmatprep.subr.bf16.mxu0 %v209_v33  ;;  %216 = vmatprep.subr.bf16.mxu1 %v209_v33 }
  0x13   :  { %212 = vmatpush1.bf16.msra.mxu0 %v211_v35  ;;  %220 = vmatpush1.bf16.msra.mxu1 %v211_v35 }
  0x92   :  { %v26_v37 = vpop.xlane.xlu0 %25  ;;  %v29_v38 = vpop.xlane.xlu1 %28 }
  0x93   :  { %v37_v39 = vmul.f32 0.015625, %v26_v37  ;;  %v38_v40 = vmul.f32 0.015625, %v29_v38 }
  0x95   :  { %v51_v41 = vadd.f32 1e-05, %v37_v39  ;;  %v52_v42 = vadd.f32 1e-05, %v38_v40 }
  0x96   :  { %v32_v43 = vpop.xlane.xlu0 %31  ;;  %v35_v44 = vpop.xlane.xlu1 %34 }
  0x97   :  { %222 = vrsqrt.f32 %v51_v41  ;;  %v39_v45 = vmul.f32 0.015625, %v32_v43  ;;  %v40_v46 = vmul.f32 0.015625, %v35_v44 }
  0x98   :  { %224 = vrsqrt.f32 %v52_v42 }
  0x99   :  { %v53_v47 = vadd.f32 1e-05, %v39_v45  ;;  %v54_v48 = vadd.f32 1e-05, %v40_v46 }
  0x9b   :  { %226 = vrsqrt.f32 %v53_v47 }
  0x9c   :  { %228 = vrsqrt.f32 %v54_v48 }
  0xa1   :  { %v223_v52 = vpop.eup %222 }
  0xa2   :  { %v225_v53 = vpop.eup %224  ;;  %v59_v55 = vmul.f32 %v223_v52, %v47_v50 }
  0xa3   :  { %v60_v57 = vmul.f32 %v225_v53, %v48_v51 }
  0xa4   :  { %193 = vmatmul.mubr.msk.f32.vlgmr.msra.gmra.mrb[0].mxu0 %vm23_vm0, %v59_v55 }
  0xa5   :  { %v227_v58 = vpop.eup %226  ;;  %161 = vmatprep.mubr.f32.mxu0 %v230_v36 }
  0xa6   :  { %v229_v59 = vpop.eup %228  ;;  %v61_v60 = vmul.f32 %v227_v58, %v49_v54 }
  0xa7   :  { %v62_v61 = vmul.f32 %v229_v59, %v50_v56 }
  0xa8   :  { %194 = vmatmul.mubr.msk.f32.gmra.mrb[2].mxu0 %vm23_vm0, %v60_v57  ;;  %195 = vmatmul.mubr.msk.f32.vlgmr.msra.gmra.mrb[0].mxu1 %vm23_vm0, %v61_v60 }
  0xa9   :  { %173 = vmatprep.mubr.f32.mxu1 %v230_v36 }
  0xac   :  { %196 = vmatmul.mubr.msk.f32.gmra.mrb[2].mxu1 %vm23_vm0, %v62_v61 }
 0x177   :  { %v157_v62 = vpop.f32.mrb[0].mxu0 }
 0x178   :  { %180 = vst [vmem:[%s369_s3] sm:$0xff] %v157_v62  ;;  %v159_v63 = vpop.f32.mrb[1].mxu0 }
 0x179   :  { %181 = vst [vmem:[%s369_s3 + $0x8] sm:$0xff] %v159_v63 }
 0x17b   :  { %v163_v0 = vpop.f32.mrb[2].mxu0  ;;  %v169_v1 = vpop.f32.mrb[0].mxu1 }
 0x17c   :  { %182 = vst [vmem:[%s369_s3 + $0x10] sm:$0xff] %v163_v0  ;;  %184 = vst [vmem:[%s369_s3 + $0x20] sm:$0xff] %v169_v1  ;;  %v165_v2 = vpop.f32.mrb[3].mxu0  ;;  %v171_v3 = vpop.f32.mrb[1].mxu1 }
 0x17d   :  { %183 = vst [vmem:[%s369_s3 + $0x18] sm:$0xff] %v165_v2  ;;  %185 = vst [vmem:[%s369_s3 + $0x28] sm:$0xff] %v171_v3 }
 0x17f   :  { %v175_v4 = vpop.f32.mrb[2].mxu1 }
 0x180   :  { %186 = vst [vmem:[%s369_s3 + $0x30] sm:$0xff] %v175_v4  ;;  %v177_v5 = vpop.f32.mrb[3].mxu1 }
 0x181   :  { %187 = vst [vmem:[%s369_s3 + $0x38] sm:$0xff] %v177_v5 }

// kernel: transformer_block_forward.6
= control target key start
LH: loop header
LB: loop body
LE: loop exit
PB: predicated region body
PF: predicated region fallthrough
CT: control target
= control target key end

     0   :  { %s989_s18 = smov 0   ;;  %s991_s19 = smov 0   ;;  %s1078_s0 = inlined_call_operand.vmem [shape: f32[8,16,16], index: 0, kind: input, shape index: {}]   ;;  %s1079_s1 = inlined_call_operand.vmem [shape: f32[8,16,16], index: 1, kind: input, shape index: {}]   ;;  %s1080_s2 = inlined_call_operand.vmem [shape: f32[8,16,16], index: 2, kind: input, shape index: {}]   ;;  %s1081_s3 = inlined_call_operand.vmem [shape: f32[16,8], index: 3, kind: input, shape index: {}]   ;;  %s1082_s4 = inlined_call_operand.vmem [shape: f32[16,8], index: 4, kind: input, shape index: {}]   ;;  %s1083_s5 = inlined_call_operand.vmem [shape: f32[8,16,16], index: 5, kind: output, shape index: {}]  }
   0x1   :  { %s993_s20 = smov 0  }
   0x2 LB: > { %s27_s21 = sadd.s32 1, %s951_s19  ;;  %p823_p0 = scmp.ge.s32.totalorder %s955_s20, 1  ;;  %s955_s20 = sphi %s993_s20, %s15_s20   ;;  %s951_s19 = sphi %s991_s19, %s1087_s19   ;;  %s947_s18 = sphi %s989_s18, %s1086_s18  }
   0x3   : > { %p29_p1 = scmp.ge.s32.totalorder %s27_s21, 8  ;;  %p228_p2 = scmp.lt.s32.totalorder %s955_s20, 9 }
   0x5   : > { %s1089_s21 = smov (%p29_p1, %s27_s21), 0  ;;  %p229_p3 = pnand %p823_p0, %p228_p2 }
   0x6   : > { %v312_v0 = vld [vmem:[%s1082_s4] sm:$0xff] (!%p229_p3)  ;;  %s957_s26 = smov (!%p229_p3), 8   ;;  %v1016_v2 = vld [vmem:[%s1082_s4 + $0x8] sm:$0xff] (!%p229_p3)  ;;  %p275_p4 = scmp.lt.s32.totalorder (!%p229_p3), %s947_s18, 7  ;;  %vm409_vm0 = vcmask (!%p229_p3), 64512   ;;  %v586_v51 = vlaneseq (!%p229_p3)  ;;  %vm598_vm3 = vcmask (!%p229_p3), 130048  }
   0x7   : > { %232 = sbr.rel (%p229_p3) target bundleno = 852 (0x354), region = 40  ;;  %v310_v1 = vld [vmem:[%s1081_s3] sm:$0xff] (!%p229_p3)  ;;  %369 = vrot.lane.b32.xlu0 (!%p229_p3), %v312_v0, %s957_s26  ;;  %v311_v3 = vld [vmem:[%s1081_s3 + $0x8] sm:$0xff] (!%p229_p3)  ;;  %s958_s10 = smov (!%p229_p3), 120   ;;  %vm1036_vm1 = vmpackc.low (!%p229_p3), %vm409_vm0, %vm409_vm0 }
   0x8   : > { %391 = vrot.lane.b32.xlu1 (!%p229_p3), %v310_v1, %s957_s26  ;;  %v587_v52 = vshrl.u32 (!%p229_p3), %v586_v51, 7  ;;  %v593_v56 = vand.u32 (!%p229_p3), 127, %v586_v51 }
   0xa   : > { %v588_v55 = vadd.s32 (!%p229_p3), 8, %v587_v52  ;;  %vm594_vm4 = vcmp.ge.s32.totalorder (!%p229_p3), %v587_v52, %v593_v56 }
   0xb   : > { %371 = vrot.lane.b32.xlu0 (!%p229_p3), %v1016_v2, %s957_s26 }
   0xc   : > { %393 = vrot.lane.b32.xlu1 (!%p229_p3), %v311_v3, %s957_s26  ;;  %vm595_vm2 = vcmp.ge.s32.totalorder (!%p229_p3), %v588_v55, %v593_v56 }
   0xe   : > { %s1091_s18 = smov (!%p275_p4, %s947_s18), 7 }
   0xf   : > { %325 = vrot.lane.b32.xlu0 %v312_v0, %s957_s26  ;;  %s1023_s6 = sshll.u32 %s1091_s18, 4 }
  0x10   : > { %347 = vrot.lane.b32.xlu1 %v310_v1, %s957_s26  ;;  %s288_s9 = scalar_lea.vmem %s1079_s1, %s1023_s6  ;;  %s282_s13 = scalar_lea.vmem %s1078_s0, %s1023_s6 }
  0x11   : > { %v306_v4 = vld [vmem:[%s288_s9] sm:$0xff]  ;;  %v307_v8 = vld [vmem:[%s288_s9 + $0x8] sm:$0xff]  ;;  %s293_s16 = scalar_lea.vmem %s1080_s2, %s1023_s6  ;;  %s302_s22 = scalar_lea.vmem %s1083_s5, %s1023_s6 }
  0x12   : > { %v304_v13 = vld [vmem:[%s282_s13] sm:$0xff]  ;;  %v305_v18 = vld [vmem:[%s282_s13 + $0x8] sm:$0xff]  ;;  %v365_v25 = vmul.f32 %v310_v1, %v306_v4  ;;  %v366_v26 = vmul.f32 %v311_v3, %v307_v8  ;;  %v387_v27 = vmul.f32 %v312_v0, %v306_v4  ;;  %v388_v32 = vmul.f32 %v1016_v2, %v307_v8 }
  0x13   : > { %327 = vrot.lane.b32.xlu0 %v1016_v2, %s957_s26  ;;  %v321_v33 = vmul.f32 %v310_v1, %v304_v13  ;;  %v343_v38 = vmul.f32 %v312_v0, %v304_v13  ;;  %v322_v42 = vmul.f32 %v311_v3, %v305_v18  ;;  %v344_v48 = vmul.f32 %v1016_v2, %v305_v18 }
  0x14   : > { %349 = vrot.lane.b32.xlu1 %v311_v3, %s957_s26  ;;  %v308_v3 = vld [vmem:[%s293_s16] sm:$0xff] }
  0x79   : > { %v370_v5 = vpop.permute.xlu0 %369 }
  0x7a   : > { %v392_v6 = vpop.permute.xlu1 %391  ;;  %v375_v7 = vmul.f32 %v370_v5, %v306_v4 }
  0x7b   : > { %v397_v9 = vmul.f32 %v392_v6, %v306_v4  ;;  %v309_v4 = vld [vmem:[%s293_s16 + $0x8] sm:$0xff] }
  0x7c   : > { %379 = vrot.lane.b32.xlu0 %v375_v7, %s958_s10  ;;  %v893_v5 = vpack.c.bf16 %v309_v4, %v308_v3 }
  0x7d   : > { %v372_v10 = vpop.permute.xlu0 %371 }
  0x7e   : > { %v394_v11 = vpop.permute.xlu1 %393  ;;  %v376_v12 = vmul.f32 %v372_v10, %v307_v8 }
  0x7f   : > { %v398_v14 = vmul.f32 %v394_v11, %v307_v8 }
  0x80   : > { %381 = vrot.lane.b32.xlu1 %v376_v12, %s958_s10  ;;  %401 = vrot.lane.b32.xlu0 %v397_v9, %s958_s10 }
  0x81   : > { %v326_v15 = vpop.permute.xlu0 %325 }
  0x82   : > { %v348_v16 = vpop.permute.xlu1 %347  ;;  %v331_v17 = vmul.f32 %v326_v15, %v304_v13 }
  0x83   : > { %v353_v19 = vmul.f32 %v348_v16, %v304_v13 }
  0x84   : > { %403 = vrot.lane.b32.xlu1 %v398_v14, %s958_s10  ;;  %335 = vrot.lane.b32.xlu0 %v331_v17, %s958_s10 }
  0x85   : > { %v328_v20 = vpop.permute.xlu0 %327 }
  0x86   : > { %v350_v21 = vpop.permute.xlu1 %349  ;;  %v332_v22 = vmul.f32 %v328_v20, %v305_v18 }
  0x87   : > { %v354_v23 = vmul.f32 %v350_v21, %v305_v18 }
  0x88   : > { %357 = vrot.lane.b32.xlu1 %v353_v19, %s958_s10  ;;  %337 = vrot.lane.b32.xlu0 %v332_v22, %s958_s10 }
  0x8c   : > { %359 = vrot.lane.b32.xlu1 %v354_v23, %s958_s10 }
  0xee   : > { %v380_v24 = vpop.permute.xlu0 %379 }
  0xef   : > { %v385_v30 = vsub.f32 %v365_v25, %v380_v24 }
  0xf2   : > { %v382_v28 = vpop.permute.xlu1 %381  ;;  %v402_v29 = vpop.permute.xlu0 %401 }
  0xf3   : > { %v386_v31 = vsub.f32 %v366_v26, %v382_v28  ;;  %v407_v39 = vadd.f32 %v402_v29, %v387_v27 }
  0xf5   : > { %v887_v35 = vpack.c.bf16 %v386_v31, %v385_v30 }
  0xf6   : > { %v404_v36 = vpop.permute.xlu1 %403  ;;  %v336_v37 = vpop.permute.xlu0 %335 }
  0xf7   : > { %v408_v40 = vadd.f32 %v404_v36, %v388_v32  ;;  %889 = vmatprep.subr.msk.bf16.mxu0 %vm1036_vm1, %v887_v35  ;;  %v341_v41 = vsub.f32 %v321_v33, %v336_v37 }
  0xf8   : > { %892 = vmatpush3.bf16.xpose.msk.msra.mxu0 %vm1036_vm1, %v887_v35 }
  0xf9   : > { %v881_v43 = vpack.c.bf16 %v408_v40, %v407_v39  ;;  %871 = vmatprep.mubr.msk.f32.mxu0 %vm409_vm0, %v341_v41 }
  0xfa   : > { %v358_v44 = vpop.permute.xlu1 %357  ;;  %v338_v45 = vpop.permute.xlu0 %337 }
  0xfb   : > { %883 = vmatprep.subr.msk.bf16.mxu1 %vm1036_vm1, %v881_v43  ;;  %v363_v46 = vadd.f32 %v358_v44, %v343_v38  ;;  %v342_v47 = vsub.f32 %v322_v42, %v338_v45 }
  0xfc   : > { %886 = vmatpush3.bf16.xpose.msk.msra.mxu1 %vm1036_vm1, %v881_v43 }
  0xfd   : > { %864 = vmatprep.mubr.msk.f32.mxu1 %vm409_vm0, %v363_v46  ;;  %894 = vmatprep.subr.bf16.mxu1 %v893_v5 }
  0xfe   : > { %v360_v49 = vpop.permute.xlu1 %359 }
  0xff   : > { %v364_v50 = vadd.f32 %v360_v49, %v344_v48  ;;  %872 = vmatmul.mubr.msk.f32.vlgmr.msra.gmra.mrb[0].mxu0 %vm409_vm0, %v342_v47 }
 0x103   : > { %865 = vmatmul.mubr.msk.f32.vlgmr.msra.gmra.mrb[0].mxu1 %vm409_vm0, %v364_v50 }
 0x104   : > { %896 = vmatpush3.bf16.msra.mxu1 %v893_v5 }
 0x1d2   : > { %v873_v53 = vpop.f32.mrb[0].mxu0 }
 0x1d3   : > { %v575_v54 = vpop.f32.mrb[1].mxu0 }
 0x1d6   : > { %v866_v57 = vpop.f32.mrb[0].mxu1 }
 0x1d7   : > { %v581_v58 = vadd.f32 %v873_v53, %v866_v57  ;;  %v488_v59 = vpop.f32.mrb[1].mxu1 }
 0x1d8   : > { %v576_v60 = vadd.f32 %v575_v54, %v488_v59 }
 0x1d9   : > { %v585_v61 = vmul.f32 0.25, %v581_v58 }
 0x1da   : > { %v584_v62 = vmul.f32 0.25, %v576_v60 }
 0x1db   : > { %v597_v63 = vsel %vm595_vm2, %v585_v61, -inf }
 0x1dc   : > { %v602_v0 = vsel %vm598_vm3, %v597_v63, -inf  ;;  %v596_v1 = vsel %vm594_vm4, %v584_v62, -inf }
 0x1dd   : > { %603 = vmax.xlane.f32.xlu1 %v602_v0  ;;  %v599_v2 = vsel %vm598_vm3, %v596_v1, -inf }
 0x1de   : > { %600 = vmax.xlane.f32.xlu0 %v599_v2 }
 0x26a   : > { %v604_v6 = vpop.xlane.xlu1 %603 }
 0x26b   : > { %v606_v7 = vsub.f32 %v597_v63, %v604_v6  ;;  %v601_v8 = vpop.xlane.xlu0 %600 }
 0x26c   : > { %v605_v9 = vsub.f32 %v596_v1, %v601_v8 }
 0x26d   : > { %v609_v10 = vmul.f32 1.442695, %v606_v7 }
 0x26e   : > { %v607_v11 = vmul.f32 1.442695, %v605_v9 }
 0x270   : > { %925 = vpow2.f32 %v607_v11 }
 0x271   : > { %927 = vpow2.f32 %v609_v10 }
 0x27a   : > { %v926_v12 = vpop.eup %925 }
 0x27b   : > { %v928_v13 = vpop.eup %927  ;;  %878 = vmatprep.mubr.msk.f32.mxu1 %vm598_vm3, %v926_v12  ;;  %v611_v14 = vsel %vm598_vm3, %v926_v12, 0.0 }
 0x27c   : > { %879 = vmatmul.mubr.msk.f32.vlgmr.msra.gmra.mrb[2].mxu1 %vm598_vm3, %v928_v13  ;;  %612 = vadd.xlane.f32.xlu0 %v611_v14  ;;  %v614_v15 = vsel %vm598_vm3, %v928_v13, 0.0 }
 0x280   : > { %615 = vadd.xlane.f32.xlu0 %v614_v15 }
 0x309   : > { %v613_v16 = vpop.xlane.xlu0 %612 }
 0x30d   : > { %v616_v17 = vpop.xlane.xlu0 %615 }
 0x30e   : > { %929 = vrcp.f32 %v616_v17 }
 0x30f   : > { %931 = vrcp.f32 %v613_v16 }
 0x318   : > { %v930_v18 = vpop.eup %929 }
 0x319   : > { %v932_v20 = vpop.eup %931 }
 0x34f   : > { %v880_v19 = vpop.f32.mrb[2].mxu1 }
 0x350   : > { %v701_v21 = vmul.f32 %v930_v18, %v880_v19  ;;  %v689_v22 = vpop.f32.mrb[3].mxu1 }
 0x351   : > { %v699_v23 = vmul.f32 %v932_v20, %v689_v22 }
 0x352   : > { %703 = vst.msk [vmem:[%s302_s22 + $0x8] sm:$0xff] %vm598_vm3, %v701_v21 }
 0x353   : > { %702 = vst.msk [vmem:[%s302_s22] sm:$0xff] %vm598_vm3, %v699_v23 }
 0x354 PF: > { %s15_s20 = sadd.s32 1, %s955_s20   ;;  %s1086_s18 = smov %s951_s19 }
 0x355   : > { %p12_p5 = scmp.ge.s32.totalorder %s15_s20, 10   ;;  %s1087_s19 = smov %s1089_s21 }
 0x357   :  { %14 = sbr.rel (!%p12_p5) target bundleno = 2 (0x2), region = 78 }

</bundles_post_ra>
